<compile_context>
chip_gen: v5e
topology: v5e:2x2
jax: 0.10.0
libtpu: 0.0.40
codegen_flags: <defaults>
</compile_context>

<pallas_src>
import functools

import jax
import jax.numpy as jnp
from jax.experimental import pallas as pl
from jax.experimental.pallas import tpu as pltpu

EPS = 1e-5
HIDDEN = 64        # feat_len == GRU hidden size
MLP_HIDDEN = 128   # first MLP layer width (fixed by the module)


def _round_up(x, m):
    return (x + m - 1) // m * m


def _row_norm(x):
    # InstanceNorm1d (no affine, no running stats): normalize each row over the
    # trailing axis, biased variance, eps=1e-5.  (For both the (B*T, C) MLP
    # case and the (B, C) fc-head case PyTorch's instance_norm reduces over the
    # trailing "length" axis per row, which is exactly this.)
    mean = jnp.mean(x, axis=-1, keepdims=True)
    var = jnp.mean(jnp.square(x - mean), axis=-1, keepdims=True)
    return (x - mean) * jax.lax.rsqrt(var + EPS)


# ---------------------------------------------------------------------------
# Fused kernel: MLP -> input-gate projection -> GRU recurrence (chunk of time
# steps, hidden state carried in VMEM scratch) -> masked gather at seq_len ->
# FC head on the last grid step.
# ---------------------------------------------------------------------------
def _fused_kernel(x_ref, slen_ref, w1_ref, b1_ref, w2_ref, b2_ref,
                  wi_ref, bi_ref, wh_ref, bh_ref, w3_ref, b3_ref,
                  w4_ref, b4_ref, o_ref, h_ref, gath_ref, *,
                  B, H, t_chunk):
    c = pl.program_id(0)
    bf16 = jnp.bfloat16

    @pl.when(c == 0)
    def _():
        h_ref[...] = jnp.zeros_like(h_ref)        # h0 = 0
        gath_ref[...] = jnp.zeros_like(gath_ref)

    # ---- MLP over the whole time chunk (two big bf16 matmuls) -------------
    xc = x_ref[...]                                           # (t_chunk*B, F)
    h1 = jnp.dot(xc.astype(bf16), w1_ref[...],
                 preferred_element_type=jnp.float32) + b1_ref[...]
    h1 = _row_norm(jnp.maximum(h1, 0.0))                      # ReLU -> InstNorm
    h2 = jnp.dot(h1.astype(bf16), w2_ref[...],
                 preferred_element_type=jnp.float32) + b2_ref[...]
    h2 = _row_norm(jnp.maximum(h2, 0.0))                      # (rows, H)

    # ---- input-side gate projections, hoisted out of the recurrence -------
    # gx[row] = x_t(b) @ [Wir|Wiz|Win]^T + [bir|biz|bin]   (padded to GP lanes)
    gx = jnp.dot(h2.astype(bf16), wi_ref[...],
                 preferred_element_type=jnp.float32) + bi_ref[...]

    slen = slen_ref[...].astype(jnp.int32)                    # (B, 1)
    wh = wh_ref[...]                                          # (H, GP) bf16
    bh = bh_ref[...]                                          # (1, GP) f32

    h = h_ref[...]                                            # (B, H) f32 carry
    gathered = gath_ref[...]                                  # (B, H) f32

    # ---- recurrence: statically unrolled in-kernel time loop --------------
    for tt in range(t_chunk):
        t = c * t_chunk + tt                                  # global time index
        gx_t = gx[tt * B:(tt + 1) * B, :]                     # (B, GP) static slice
        gh = jnp.dot(h.astype(bf16), wh,
                     preferred_element_type=jnp.float32) + bh
        r = jax.nn.sigmoid(gx_t[:, 0:H] + gh[:, 0:H])
        z = jax.nn.sigmoid(gx_t[:, H:2 * H] + gh[:, H:2 * H])
        n = jnp.tanh(gx_t[:, 2 * H:3 * H] + r * gh[:, 2 * H:3 * H])
        h = (1.0 - z) * n + z * h                             # f32 update
        # in-kernel gather: keep h at step t for rows with seq_len_vec[b] == t
        m = (slen == t).astype(jnp.float32)                   # (B, 1)
        gathered = gathered + m * (h - gathered)

    h_ref[...] = h
    gath_ref[...] = gathered

    # ---- FC head, fused into the last grid step ---------------------------
    @pl.when(c == pl.num_programs(0) - 1)
    def _():
        h3 = jnp.dot(gathered.astype(bf16), w3_ref[...],
                     preferred_element_type=jnp.float32) + b3_ref[...]
        h3 = _row_norm(jnp.maximum(h3, 0.0))
        o_ref[...] = jnp.dot(h3.astype(bf16), w4_ref[...],
                             preferred_element_type=jnp.float32) + b4_ref[...]


def _fused_forward(x_tm, slen, w1, b1, w2, b2, wi, bi, wh, bh, w3, b3, w4, b4,
                   *, B, T, H, t_chunk):
    # B here is the padded batch (multiple of 8).
    rows = t_chunk * B
    F = x_tm.shape[1]
    MH = w1.shape[1]
    GP = wi.shape[1]
    half = w3.shape[1]
    C = w4.shape[1]
    assert T % t_chunk == 0
    n_chunks = T // t_chunk
    assert rows % 8 == 0

    const = lambda c: (0, 0)   # weights / biases: same block every grid step
    kernel = functools.partial(_fused_kernel, B=B, H=H, t_chunk=t_chunk)
    return pl.pallas_call(
        kernel,
        out_shape=jax.ShapeDtypeStruct((B, C), jnp.float32),
        grid_spec=pltpu.PrefetchScalarGridSpec(
            num_scalar_prefetch=0,
            grid=(n_chunks,),
            in_specs=[
                pl.BlockSpec((rows, F), lambda c: (c, 0)),    # x (time-major rows)
                pl.BlockSpec((B, 1), const),                  # seq_len_vec
                pl.BlockSpec((F, MH), const),                 # w1 (bf16)
                pl.BlockSpec((1, MH), const),                 # b1
                pl.BlockSpec((MH, H), const),                 # w2 (bf16)
                pl.BlockSpec((1, H), const),                  # b2
                pl.BlockSpec((H, GP), const),                 # Wi cat (bf16)
                pl.BlockSpec((1, GP), const),                 # bi cat
                pl.BlockSpec((H, GP), const),                 # Wh cat (bf16)
                pl.BlockSpec((1, GP), const),                 # bh cat
                pl.BlockSpec((H, half), const),               # w3 (bf16)
                pl.BlockSpec((1, half), const),               # b3
                pl.BlockSpec((half, C), const),               # w4 (bf16)
                pl.BlockSpec((1, C), const),                  # b4
            ],
            out_specs=pl.BlockSpec((B, C), const),            # resident logits block
            scratch_shapes=[
                pltpu.VMEM((B, H), jnp.float32),              # hidden-state carry
                pltpu.VMEM((B, H), jnp.float32),              # gathered h at seq_len
            ],
        ),
        compiler_params=pltpu.CompilerParams(
            dimension_semantics=("arbitrary",)),              # sequential over time
    )(x_tm, slen, w1, b1, w2, b2, wi, bi, wh, bh, w3, b3, w4, b4)


def _default_chunk(T):
    # Largest divisor of T capped at 32 (bounds in-kernel static unrolling).
    cands = [d for d in range(1, min(T, 32) + 1) if T % d == 0]
    return max(cands)


# ---------------------------------------------------------------------------
# Parameters (PyTorch-layout GRU weights packed into concatenated/padded form)
# ---------------------------------------------------------------------------
def init_params(key, input_size, num_classes, hidden=HIDDEN):
    H = hidden
    G = 3 * H
    GP = _round_up(G, 128)     # pad gate-concat width to a lane multiple
    keys = jax.random.split(key, 12)
    s = 0.1

    def mk(k, shape):
        return jax.random.normal(k, shape, jnp.float32) * s

    # PyTorch nn.GRU layout: weight_ih_l0 (3H, in), weight_hh_l0 (3H, H),
    # biases (3H,), gate order [r, z, n].
    w_ih = mk(keys[4], (G, H))
    w_hh = mk(keys[5], (G, H))
    b_ih = mk(keys[6], (G,))
    b_hh = mk(keys[7], (G,))

    def pad_cols(a):
        return jnp.pad(a, ((0, 0), (0, GP - G)))

    return {
        # mlp (Linear weights stored transposed: x @ W)
        "w1": mk(keys[0], (input_size, MLP_HIDDEN)), "b1": mk(keys[1], (1, MLP_HIDDEN)),
        "w2": mk(keys[2], (MLP_HIDDEN, H)),          "b2": mk(keys[3], (1, H)),
        # gru: concatenated [r|z|n], transposed, zero-padded to GP columns
        "wi": pad_cols(w_ih.T), "bi": pad_cols(b_ih.reshape(1, G)),
        "wh": pad_cols(w_hh.T), "bh": pad_cols(b_hh.reshape(1, G)),
        # fc
        "w3": mk(keys[8], (H, H // 2)), "b3": mk(keys[9], (1, H // 2)),
        "w4": mk(keys[10], (H // 2, num_classes)),
        "b4": jnp.zeros((1, num_classes), jnp.float32),
    }


@functools.partial(jax.jit, static_argnames=("t_chunk",))
def gru_classifier_forward(params, x, seq_len_vec, t_chunk=None):
    B, T, F = x.shape
    H = params["w2"].shape[1]
    if t_chunk is None:
        t_chunk = _default_chunk(T)

    # Pad batch to a sublane multiple so every per-time-step slice in the
    # kernel is 8-row aligned; padded rows get seq_len = -1 (never gathered).
    BP = _round_up(max(B, 8), 8)
    if BP != B:
        x = jnp.pad(x, ((0, BP - B), (0, 0), (0, 0)))
    slen = seq_len_vec.astype(jnp.int32).reshape(B, 1)
    if BP != B:
        slen = jnp.pad(slen, ((0, BP - B), (0, 0)), constant_values=-1)

    # Time-major flattened rows (row = t*BP + b): one cheap XLA copy of the raw
    # input; everything downstream runs inside one fused Pallas kernel.
    x_tm = jnp.transpose(x, (1, 0, 2)).reshape(T * BP, F)

    bf16 = jnp.bfloat16
    out = _fused_forward(
        x_tm, slen,
        params["w1"].astype(bf16), params["b1"],
        params["w2"].astype(bf16), params["b2"],
        params["wi"].astype(bf16), params["bi"],
        params["wh"].astype(bf16), params["bh"],
        params["w3"].astype(bf16), params["b3"],
        params["w4"].astype(bf16), params["b4"],
        B=BP, T=T, H=H, t_chunk=t_chunk)
    return out[:B]


# ---------------------------------------------------------------------------
# Pure-JAX reference (f32) for a correctness sanity check.
# ---------------------------------------------------------------------------
def reference_forward(params, x, seq_len_vec):
    B, T, F = x.shape
    H = params["w2"].shape[1]
    G = 3 * H
    xf = x.reshape(B * T, F)
    h1 = _row_norm(jnp.maximum(xf @ params["w1"] + params["b1"], 0.0))
    h2 = _row_norm(jnp.maximum(h1 @ params["w2"] + params["b2"], 0.0))
    seq = h2.reshape(B, T, H)
    wi, bi = params["wi"][:, :G], params["bi"][:, :G]
    wh, bh = params["wh"][:, :G], params["bh"][:, :G]
    h = jnp.zeros((B, H), jnp.float32)
    outs = []
    for t in range(T):
        gx = seq[:, t, :] @ wi + bi
        gh = h @ wh + bh
        r = jax.nn.sigmoid(gx[:, :H] + gh[:, :H])
        z = jax.nn.sigmoid(gx[:, H:2 * H] + gh[:, H:2 * H])
        n = jnp.tanh(gx[:, 2 * H:] + r * gh[:, 2 * H:])
        h = (1.0 - z) * n + z * h
        outs.append(h)
    out = jnp.stack(outs, axis=1)                        # (B, T, H)
    g = out[jnp.arange(B), seq_len_vec, :]
    h3 = _row_norm(jnp.maximum(g @ params["w3"] + params["b3"], 0.0))
    return h3 @ params["w4"] + params["b4"]


if __name__ == "__main__":
    key = jax.random.PRNGKey(0)
    k_x, k_p = jax.random.split(key)

    B, T, F = 4, 8, 16
    NUM_CLASSES = 5

    x = jax.random.normal(k_x, (B, T, F), jnp.float32)
    seq_len_vec = jnp.array([T - 1, 3, 0, 5], dtype=jnp.int32)
    params = init_params(k_p, F, NUM_CLASSES)

    # t_chunk=4 -> grid=(2,): exercises the cross-chunk hidden-state carry.
    logits = gru_classifier_forward(params, x, seq_len_vec, t_chunk=4)
    jax.block_until_ready(logits)

    assert logits.shape == (B, NUM_CLASSES)
    assert bool(jnp.all(jnp.isfinite(logits)))

    ref = reference_forward(params, x, seq_len_vec)
    assert bool(jnp.allclose(logits, ref, atol=8e-2, rtol=8e-2)), (
        "mismatch vs. pure-JAX reference")

    print("KERNEL_OK")
</pallas_src>

<mosaic_0001>
module attributes {stable_mosaic.version = 11 : i64} {
  func.func @_fused_kernel(%arg0: i32, %arg1: memref<32x16xf32, #tpu.memory_space<vmem>>, %arg2: memref<8x1xi32, #tpu.memory_space<vmem>>, %arg3: memref<16x128xbf16, #tpu.memory_space<vmem>>, %arg4: memref<1x128xf32, #tpu.memory_space<vmem>>, %arg5: memref<128x64xbf16, #tpu.memory_space<vmem>>, %arg6: memref<1x64xf32, #tpu.memory_space<vmem>>, %arg7: memref<64x256xbf16, #tpu.memory_space<vmem>>, %arg8: memref<1x256xf32, #tpu.memory_space<vmem>>, %arg9: memref<64x256xbf16, #tpu.memory_space<vmem>>, %arg10: memref<1x256xf32, #tpu.memory_space<vmem>>, %arg11: memref<64x32xbf16, #tpu.memory_space<vmem>>, %arg12: memref<1x32xf32, #tpu.memory_space<vmem>>, %arg13: memref<32x5xbf16, #tpu.memory_space<vmem>>, %arg14: memref<1x5xf32, #tpu.memory_space<vmem>>, %arg15: memref<8x5xf32, #tpu.memory_space<vmem>>, %arg16: memref<8x64xf32, #tpu.memory_space<vmem>>, %arg17: memref<8x64xf32, #tpu.memory_space<vmem>>) attributes {dimension_semantics = [#tpu.dimension_semantics<arbitrary>], iteration_bounds = array<i64: 2>, scalar_prefetch = 0 : i64, scratch_operands = 2 : i64, tpu.core_type = #tpu.core_type<tc>, window_params = [{transform_indices = @transform_0, window_bounds = array<i64: 32, 16>}, {pipeline_mode = #tpu.pipeline_mode<synchronous>, transform_indices = @transform_1, window_bounds = array<i64: 8, 1>}, {pipeline_mode = #tpu.pipeline_mode<synchronous>, transform_indices = @transform_2, window_bounds = array<i64: 16, 128>}, {pipeline_mode = #tpu.pipeline_mode<synchronous>, transform_indices = @transform_3, window_bounds = array<i64: 1, 128>}, {pipeline_mode = #tpu.pipeline_mode<synchronous>, transform_indices = @transform_4, window_bounds = array<i64: 128, 64>}, {pipeline_mode = #tpu.pipeline_mode<synchronous>, transform_indices = @transform_5, window_bounds = array<i64: 1, 64>}, {pipeline_mode = #tpu.pipeline_mode<synchronous>, transform_indices = @transform_6, window_bounds = array<i64: 64, 256>}, {pipeline_mode = #tpu.pipeline_mode<synchronous>, transform_indices = @transform_7, window_bounds = array<i64: 1, 256>}, {pipeline_mode = #tpu.pipeline_mode<synchronous>, transform_indices = @transform_8, window_bounds = array<i64: 64, 256>}, {pipeline_mode = #tpu.pipeline_mode<synchronous>, transform_indices = @transform_9, window_bounds = array<i64: 1, 256>}, {pipeline_mode = #tpu.pipeline_mode<synchronous>, transform_indices = @transform_10, window_bounds = array<i64: 64, 32>}, {pipeline_mode = #tpu.pipeline_mode<synchronous>, transform_indices = @transform_11, window_bounds = array<i64: 1, 32>}, {pipeline_mode = #tpu.pipeline_mode<synchronous>, transform_indices = @transform_12, window_bounds = array<i64: 32, 5>}, {pipeline_mode = #tpu.pipeline_mode<synchronous>, transform_indices = @transform_13, window_bounds = array<i64: 1, 5>}, {pipeline_mode = #tpu.pipeline_mode<synchronous>, transform_indices = @transform_14, window_bounds = array<i64: 8, 5>}]} {
    %c0_i32 = arith.constant 0 : i32
    %0 = arith.cmpi eq, %arg0, %c0_i32 : i32
    %1 = arith.extui %0 : i1 to i32
    %c0_i32_0 = arith.constant 0 : i32
    %2 = arith.cmpi ne, %1, %c0_i32_0 : i32
    scf.if %2 {
      %cst_64 = arith.constant 0.000000e+00 : f32
      %236 = vector.broadcast %cst_64 : f32 to vector<8x64xf32>
      %c0_65 = arith.constant 0 : index
      %c0_66 = arith.constant 0 : index
      %237 = vector.load %arg16[%c0_65, %c0_66] : memref<8x64xf32, #tpu.memory_space<vmem>>, vector<8x64xf32>
      tpu.vector_store %arg16[%c0_65, %c0_66], %236 {strides = array<i32>} : memref<8x64xf32, #tpu.memory_space<vmem>>, vector<8x64xf32>,
      %cst_67 = arith.constant 0.000000e+00 : f32
      %238 = vector.broadcast %cst_67 : f32 to vector<8x64xf32>
      %c0_68 = arith.constant 0 : index
      %c0_69 = arith.constant 0 : index
      %239 = vector.load %arg17[%c0_68, %c0_69] : memref<8x64xf32, #tpu.memory_space<vmem>>, vector<8x64xf32>
      tpu.vector_store %arg17[%c0_68, %c0_69], %238 {strides = array<i32>} : memref<8x64xf32, #tpu.memory_space<vmem>>, vector<8x64xf32>,
    } else {
    }
    %c0 = arith.constant 0 : index
    %c0_1 = arith.constant 0 : index
    %3 = vector.load %arg1[%c0, %c0_1] : memref<32x16xf32, #tpu.memory_space<vmem>>, vector<32x16xf32>
    %4 = arith.truncf %3 : vector<32x16xf32> to vector<32x16xbf16>
    %c0_2 = arith.constant 0 : index
    %c0_3 = arith.constant 0 : index
    %5 = vector.load %arg3[%c0_2, %c0_3] : memref<16x128xbf16, #tpu.memory_space<vmem>>, vector<16x128xbf16>
    %cst = arith.constant dense<0.000000e+00> : vector<32x128xf32>
    %6 = tpu.matmul %4, %5, %cst {dimension_numbers = #tpu.dot_dimension_numbers<[1], [0], [0], [1], [0, 0, 1, 1], [], []>} : vector<32x16xbf16>, vector<16x128xbf16>, vector<32x128xf32> -> vector<32x128xf32>
    %c0_4 = arith.constant 0 : index
    %c0_5 = arith.constant 0 : index
    %7 = vector.load %arg4[%c0_4, %c0_5] : memref<1x128xf32, #tpu.memory_space<vmem>>, vector<1x128xf32>
    %8 = vector.broadcast %7 : vector<1x128xf32> to vector<32x128xf32>
    %9 = arith.addf %6, %8 : vector<32x128xf32>
    %cst_6 = arith.constant 0.000000e+00 : f32
    %10 = vector.broadcast %cst_6 : f32 to vector<32x128xf32>
    %11 = arith.maximumf %9, %10 : vector<32x128xf32>
    %cst_7 = arith.constant dense<0.000000e+00> : vector<32xf32>
    %12 = vector.multi_reduction <add>, %11, %cst_7 [1] : vector<32x128xf32> to vector<32xf32>
    %13 = vector.shape_cast %12 : vector<32xf32> to vector<32x1xf32>
    %cst_8 = arith.constant 1.280000e+02 : f32
    %14 = vector.broadcast %cst_8 : f32 to vector<32x1xf32>
    %15 = arith.divf %13, %14 : vector<32x1xf32>
    %16 = vector.broadcast %15 : vector<32x1xf32> to vector<32x128xf32>
    %17 = arith.subf %11, %16 : vector<32x128xf32>
    %18 = arith.mulf %17, %17 : vector<32x128xf32>
    %cst_9 = arith.constant dense<0.000000e+00> : vector<32xf32>
    %19 = vector.multi_reduction <add>, %18, %cst_9 [1] : vector<32x128xf32> to vector<32xf32>
    %20 = vector.shape_cast %19 : vector<32xf32> to vector<32x1xf32>
    %cst_10 = arith.constant 1.280000e+02 : f32
    %21 = vector.broadcast %cst_10 : f32 to vector<32x1xf32>
    %22 = arith.divf %20, %21 : vector<32x1xf32>
    %23 = vector.broadcast %15 : vector<32x1xf32> to vector<32x128xf32>
    %24 = arith.subf %11, %23 : vector<32x128xf32>
    %cst_11 = arith.constant 9.99999974E-6 : f32
    %25 = vector.broadcast %cst_11 : f32 to vector<32x1xf32>
    %26 = arith.addf %22, %25 : vector<32x1xf32>
    %27 = math.rsqrt %26 : vector<32x1xf32>
    %28 = vector.broadcast %27 : vector<32x1xf32> to vector<32x128xf32>
    %29 = arith.mulf %24, %28 : vector<32x128xf32>
    %30 = arith.truncf %29 : vector<32x128xf32> to vector<32x128xbf16>
    %c0_12 = arith.constant 0 : index
    %c0_13 = arith.constant 0 : index
    %31 = vector.load %arg5[%c0_12, %c0_13] : memref<128x64xbf16, #tpu.memory_space<vmem>>, vector<128x64xbf16>
    %cst_14 = arith.constant dense<0.000000e+00> : vector<32x64xf32>
    %32 = tpu.matmul %30, %31, %cst_14 {dimension_numbers = #tpu.dot_dimension_numbers<[1], [0], [0], [1], [0, 0, 1, 1], [], []>} : vector<32x128xbf16>, vector<128x64xbf16>, vector<32x64xf32> -> vector<32x64xf32>
    %c0_15 = arith.constant 0 : index
    %c0_16 = arith.constant 0 : index
    %33 = vector.load %arg6[%c0_15, %c0_16] : memref<1x64xf32, #tpu.memory_space<vmem>>, vector<1x64xf32>
    %34 = vector.broadcast %33 : vector<1x64xf32> to vector<32x64xf32>
    %35 = arith.addf %32, %34 : vector<32x64xf32>
    %cst_17 = arith.constant 0.000000e+00 : f32
    %36 = vector.broadcast %cst_17 : f32 to vector<32x64xf32>
    %37 = arith.maximumf %35, %36 : vector<32x64xf32>
    %cst_18 = arith.constant dense<0.000000e+00> : vector<32xf32>
    %38 = vector.multi_reduction <add>, %37, %cst_18 [1] : vector<32x64xf32> to vector<32xf32>
    %39 = vector.shape_cast %38 : vector<32xf32> to vector<32x1xf32>
    %cst_19 = arith.constant 6.400000e+01 : f32
    %40 = vector.broadcast %cst_19 : f32 to vector<32x1xf32>
    %41 = arith.divf %39, %40 : vector<32x1xf32>
    %42 = vector.broadcast %41 : vector<32x1xf32> to vector<32x64xf32>
    %43 = arith.subf %37, %42 : vector<32x64xf32>
    %44 = arith.mulf %43, %43 : vector<32x64xf32>
    %cst_20 = arith.constant dense<0.000000e+00> : vector<32xf32>
    %45 = vector.multi_reduction <add>, %44, %cst_20 [1] : vector<32x64xf32> to vector<32xf32>
    %46 = vector.shape_cast %45 : vector<32xf32> to vector<32x1xf32>
    %cst_21 = arith.constant 6.400000e+01 : f32
    %47 = vector.broadcast %cst_21 : f32 to vector<32x1xf32>
    %48 = arith.divf %46, %47 : vector<32x1xf32>
    %49 = vector.broadcast %41 : vector<32x1xf32> to vector<32x64xf32>
    %50 = arith.subf %37, %49 : vector<32x64xf32>
    %cst_22 = arith.constant 9.99999974E-6 : f32
    %51 = vector.broadcast %cst_22 : f32 to vector<32x1xf32>
    %52 = arith.addf %48, %51 : vector<32x1xf32>
    %53 = math.rsqrt %52 : vector<32x1xf32>
    %54 = vector.broadcast %53 : vector<32x1xf32> to vector<32x64xf32>
    %55 = arith.mulf %50, %54 : vector<32x64xf32>
    %56 = arith.truncf %55 : vector<32x64xf32> to vector<32x64xbf16>
    %c0_23 = arith.constant 0 : index
    %c0_24 = arith.constant 0 : index
    %57 = vector.load %arg7[%c0_23, %c0_24] : memref<64x256xbf16, #tpu.memory_space<vmem>>, vector<64x256xbf16>
    %cst_25 = arith.constant dense<0.000000e+00> : vector<32x256xf32>
    %58 = tpu.matmul %56, %57, %cst_25 {dimension_numbers = #tpu.dot_dimension_numbers<[1], [0], [0], [1], [0, 0, 1, 1], [], []>} : vector<32x64xbf16>, vector<64x256xbf16>, vector<32x256xf32> -> vector<32x256xf32>
    %c0_26 = arith.constant 0 : index
    %c0_27 = arith.constant 0 : index
    %59 = vector.load %arg8[%c0_26, %c0_27] : memref<1x256xf32, #tpu.memory_space<vmem>>, vector<1x256xf32>
    %60 = vector.broadcast %59 : vector<1x256xf32> to vector<32x256xf32>
    %61 = arith.addf %58, %60 : vector<32x256xf32>
    %c0_28 = arith.constant 0 : index
    %c0_29 = arith.constant 0 : index
    %62 = vector.load %arg2[%c0_28, %c0_29] : memref<8x1xi32, #tpu.memory_space<vmem>>, vector<8x1xi32>
    %c0_30 = arith.constant 0 : index
    %c0_31 = arith.constant 0 : index
    %63 = vector.load %arg9[%c0_30, %c0_31] : memref<64x256xbf16, #tpu.memory_space<vmem>>, vector<64x256xbf16>
    %c0_32 = arith.constant 0 : index
    %c0_33 = arith.constant 0 : index
    %64 = vector.load %arg10[%c0_32, %c0_33] : memref<1x256xf32, #tpu.memory_space<vmem>>, vector<1x256xf32>
    %c0_34 = arith.constant 0 : index
    %c0_35 = arith.constant 0 : index
    %65 = vector.load %arg16[%c0_34, %c0_35] : memref<8x64xf32, #tpu.memory_space<vmem>>, vector<8x64xf32>
    %c0_36 = arith.constant 0 : index
    %c0_37 = arith.constant 0 : index
    %66 = vector.load %arg17[%c0_36, %c0_37] : memref<8x64xf32, #tpu.memory_space<vmem>>, vector<8x64xf32>
    %c4_i32 = arith.constant 4 : i32
    %67 = arith.muli %arg0, %c4_i32 : i32
    %c0_i32_38 = arith.constant 0 : i32
    %68 = arith.addi %67, %c0_i32_38 : i32
    %69 = vector.extract_strided_slice %61 {offsets = [0, 0], sizes = [8, 256], strides = [1, 1]} : vector<32x256xf32> to vector<8x256xf32>
    %70 = arith.truncf %65 : vector<8x64xf32> to vector<8x64xbf16>
    %cst_39 = arith.constant dense<0.000000e+00> : vector<8x256xf32>
    %71 = tpu.matmul %70, %63, %cst_39 {dimension_numbers = #tpu.dot_dimension_numbers<[1], [0], [0], [1], [0, 0, 1, 1], [], []>} : vector<8x64xbf16>, vector<64x256xbf16>, vector<8x256xf32> -> vector<8x256xf32>
    %72 = vector.broadcast %64 : vector<1x256xf32> to vector<8x256xf32>
    %73 = arith.addf %71, %72 : vector<8x256xf32>
    %74 = vector.extract_strided_slice %69 {offsets = [0, 0], sizes = [8, 64], strides = [1, 1]} : vector<8x256xf32> to vector<8x64xf32>
    %75 = vector.extract_strided_slice %73 {offsets = [0, 0], sizes = [8, 64], strides = [1, 1]} : vector<8x256xf32> to vector<8x64xf32>
    %76 = arith.addf %74, %75 : vector<8x64xf32>
    %77 = arith.negf %76 : vector<8x64xf32>
    %78 = math.exp %77 : vector<8x64xf32>
    %cst_40 = arith.constant 1.000000e+00 : f32
    %79 = vector.broadcast %cst_40 : f32 to vector<8x64xf32>
    %80 = arith.addf %79, %78 : vector<8x64xf32>
    %81 = arith.divf %79, %80 : vector<8x64xf32>
    %82 = vector.extract_strided_slice %69 {offsets = [0, 64], sizes = [8, 64], strides = [1, 1]} : vector<8x256xf32> to vector<8x64xf32>
    %83 = vector.extract_strided_slice %73 {offsets = [0, 64], sizes = [8, 64], strides = [1, 1]} : vector<8x256xf32> to vector<8x64xf32>
    %84 = arith.addf %82, %83 : vector<8x64xf32>
    %85 = arith.negf %84 : vector<8x64xf32>
    %86 = math.exp %85 : vector<8x64xf32>
    %cst_41 = arith.constant 1.000000e+00 : f32
    %87 = vector.broadcast %cst_41 : f32 to vector<8x64xf32>
    %88 = arith.addf %87, %86 : vector<8x64xf32>
    %89 = arith.divf %87, %88 : vector<8x64xf32>
    %90 = vector.extract_strided_slice %69 {offsets = [0, 128], sizes = [8, 64], strides = [1, 1]} : vector<8x256xf32> to vector<8x64xf32>
    %91 = vector.extract_strided_slice %73 {offsets = [0, 128], sizes = [8, 64], strides = [1, 1]} : vector<8x256xf32> to vector<8x64xf32>
    %92 = arith.mulf %81, %91 : vector<8x64xf32>
    %93 = arith.addf %90, %92 : vector<8x64xf32>
    %94 = math.tanh %93 : vector<8x64xf32>
    %cst_42 = arith.constant 1.000000e+00 : f32
    %95 = vector.broadcast %cst_42 : f32 to vector<8x64xf32>
    %96 = arith.subf %95, %89 : vector<8x64xf32>
    %97 = arith.mulf %96, %94 : vector<8x64xf32>
    %98 = arith.mulf %89, %65 : vector<8x64xf32>
    %99 = arith.addf %97, %98 : vector<8x64xf32>
    %100 = vector.broadcast %68 : i32 to vector<8x1xi32>
    %101 = arith.cmpi eq, %62, %100 : vector<8x1xi32>
    %102 = arith.extui %101 : vector<8x1xi1> to vector<8x1xi32>
    %103 = arith.sitofp %102 : vector<8x1xi32> to vector<8x1xf32>
    %104 = arith.subf %99, %66 : vector<8x64xf32>
    %105 = vector.broadcast %103 : vector<8x1xf32> to vector<8x64xf32>
    %106 = arith.mulf %105, %104 : vector<8x64xf32>
    %107 = arith.addf %66, %106 : vector<8x64xf32>
    %c4_i32_43 = arith.constant 4 : i32
    %108 = arith.muli %arg0, %c4_i32_43 : i32
    %c1_i32 = arith.constant 1 : i32
    %109 = arith.addi %108, %c1_i32 : i32
    %110 = vector.extract_strided_slice %61 {offsets = [8, 0], sizes = [8, 256], strides = [1, 1]} : vector<32x256xf32> to vector<8x256xf32>
    %111 = arith.truncf %99 : vector<8x64xf32> to vector<8x64xbf16>
    %cst_44 = arith.constant dense<0.000000e+00> : vector<8x256xf32>
    %112 = tpu.matmul %111, %63, %cst_44 {dimension_numbers = #tpu.dot_dimension_numbers<[1], [0], [0], [1], [0, 0, 1, 1], [], []>} : vector<8x64xbf16>, vector<64x256xbf16>, vector<8x256xf32> -> vector<8x256xf32>
    %113 = vector.broadcast %64 : vector<1x256xf32> to vector<8x256xf32>
    %114 = arith.addf %112, %113 : vector<8x256xf32>
    %115 = vector.extract_strided_slice %110 {offsets = [0, 0], sizes = [8, 64], strides = [1, 1]} : vector<8x256xf32> to vector<8x64xf32>
    %116 = vector.extract_strided_slice %114 {offsets = [0, 0], sizes = [8, 64], strides = [1, 1]} : vector<8x256xf32> to vector<8x64xf32>
    %117 = arith.addf %115, %116 : vector<8x64xf32>
    %118 = arith.negf %117 : vector<8x64xf32>
    %119 = math.exp %118 : vector<8x64xf32>
    %cst_45 = arith.constant 1.000000e+00 : f32
    %120 = vector.broadcast %cst_45 : f32 to vector<8x64xf32>
    %121 = arith.addf %120, %119 : vector<8x64xf32>
    %122 = arith.divf %120, %121 : vector<8x64xf32>
    %123 = vector.extract_strided_slice %110 {offsets = [0, 64], sizes = [8, 64], strides = [1, 1]} : vector<8x256xf32> to vector<8x64xf32>
    %124 = vector.extract_strided_slice %114 {offsets = [0, 64], sizes = [8, 64], strides = [1, 1]} : vector<8x256xf32> to vector<8x64xf32>
    %125 = arith.addf %123, %124 : vector<8x64xf32>
    %126 = arith.negf %125 : vector<8x64xf32>
    %127 = math.exp %126 : vector<8x64xf32>
    %cst_46 = arith.constant 1.000000e+00 : f32
    %128 = vector.broadcast %cst_46 : f32 to vector<8x64xf32>
    %129 = arith.addf %128, %127 : vector<8x64xf32>
    %130 = arith.divf %128, %129 : vector<8x64xf32>
    %131 = vector.extract_strided_slice %110 {offsets = [0, 128], sizes = [8, 64], strides = [1, 1]} : vector<8x256xf32> to vector<8x64xf32>
    %132 = vector.extract_strided_slice %114 {offsets = [0, 128], sizes = [8, 64], strides = [1, 1]} : vector<8x256xf32> to vector<8x64xf32>
    %133 = arith.mulf %122, %132 : vector<8x64xf32>
    %134 = arith.addf %131, %133 : vector<8x64xf32>
    %135 = math.tanh %134 : vector<8x64xf32>
    %cst_47 = arith.constant 1.000000e+00 : f32
    %136 = vector.broadcast %cst_47 : f32 to vector<8x64xf32>
    %137 = arith.subf %136, %130 : vector<8x64xf32>
    %138 = arith.mulf %137, %135 : vector<8x64xf32>
    %139 = arith.mulf %130, %99 : vector<8x64xf32>
    %140 = arith.addf %138, %139 : vector<8x64xf32>
    %141 = vector.broadcast %109 : i32 to vector<8x1xi32>
    %142 = arith.cmpi eq, %62, %141 : vector<8x1xi32>
    %143 = arith.extui %142 : vector<8x1xi1> to vector<8x1xi32>
    %144 = arith.sitofp %143 : vector<8x1xi32> to vector<8x1xf32>
    %145 = arith.subf %140, %107 : vector<8x64xf32>
    %146 = vector.broadcast %144 : vector<8x1xf32> to vector<8x64xf32>
    %147 = arith.mulf %146, %145 : vector<8x64xf32>
    %148 = arith.addf %107, %147 : vector<8x64xf32>
    %c4_i32_48 = arith.constant 4 : i32
    %149 = arith.muli %arg0, %c4_i32_48 : i32
    %c2_i32 = arith.constant 2 : i32
    %150 = arith.addi %149, %c2_i32 : i32
    %151 = vector.extract_strided_slice %61 {offsets = [16, 0], sizes = [8, 256], strides = [1, 1]} : vector<32x256xf32> to vector<8x256xf32>
    %152 = arith.truncf %140 : vector<8x64xf32> to vector<8x64xbf16>
    %cst_49 = arith.constant dense<0.000000e+00> : vector<8x256xf32>
    %153 = tpu.matmul %152, %63, %cst_49 {dimension_numbers = #tpu.dot_dimension_numbers<[1], [0], [0], [1], [0, 0, 1, 1], [], []>} : vector<8x64xbf16>, vector<64x256xbf16>, vector<8x256xf32> -> vector<8x256xf32>
    %154 = vector.broadcast %64 : vector<1x256xf32> to vector<8x256xf32>
    %155 = arith.addf %153, %154 : vector<8x256xf32>
    %156 = vector.extract_strided_slice %151 {offsets = [0, 0], sizes = [8, 64], strides = [1, 1]} : vector<8x256xf32> to vector<8x64xf32>
    %157 = vector.extract_strided_slice %155 {offsets = [0, 0], sizes = [8, 64], strides = [1, 1]} : vector<8x256xf32> to vector<8x64xf32>
    %158 = arith.addf %156, %157 : vector<8x64xf32>
    %159 = arith.negf %158 : vector<8x64xf32>
    %160 = math.exp %159 : vector<8x64xf32>
    %cst_50 = arith.constant 1.000000e+00 : f32
    %161 = vector.broadcast %cst_50 : f32 to vector<8x64xf32>
    %162 = arith.addf %161, %160 : vector<8x64xf32>
    %163 = arith.divf %161, %162 : vector<8x64xf32>
    %164 = vector.extract_strided_slice %151 {offsets = [0, 64], sizes = [8, 64], strides = [1, 1]} : vector<8x256xf32> to vector<8x64xf32>
    %165 = vector.extract_strided_slice %155 {offsets = [0, 64], sizes = [8, 64], strides = [1, 1]} : vector<8x256xf32> to vector<8x64xf32>
    %166 = arith.addf %164, %165 : vector<8x64xf32>
    %167 = arith.negf %166 : vector<8x64xf32>
    %168 = math.exp %167 : vector<8x64xf32>
    %cst_51 = arith.constant 1.000000e+00 : f32
    %169 = vector.broadcast %cst_51 : f32 to vector<8x64xf32>
    %170 = arith.addf %169, %168 : vector<8x64xf32>
    %171 = arith.divf %169, %170 : vector<8x64xf32>
    %172 = vector.extract_strided_slice %151 {offsets = [0, 128], sizes = [8, 64], strides = [1, 1]} : vector<8x256xf32> to vector<8x64xf32>
    %173 = vector.extract_strided_slice %155 {offsets = [0, 128], sizes = [8, 64], strides = [1, 1]} : vector<8x256xf32> to vector<8x64xf32>
    %174 = arith.mulf %163, %173 : vector<8x64xf32>
    %175 = arith.addf %172, %174 : vector<8x64xf32>
    %176 = math.tanh %175 : vector<8x64xf32>
    %cst_52 = arith.constant 1.000000e+00 : f32
    %177 = vector.broadcast %cst_52 : f32 to vector<8x64xf32>
    %178 = arith.subf %177, %171 : vector<8x64xf32>
    %179 = arith.mulf %178, %176 : vector<8x64xf32>
    %180 = arith.mulf %171, %140 : vector<8x64xf32>
    %181 = arith.addf %179, %180 : vector<8x64xf32>
    %182 = vector.broadcast %150 : i32 to vector<8x1xi32>
    %183 = arith.cmpi eq, %62, %182 : vector<8x1xi32>
    %184 = arith.extui %183 : vector<8x1xi1> to vector<8x1xi32>
    %185 = arith.sitofp %184 : vector<8x1xi32> to vector<8x1xf32>
    %186 = arith.subf %181, %148 : vector<8x64xf32>
    %187 = vector.broadcast %185 : vector<8x1xf32> to vector<8x64xf32>
    %188 = arith.mulf %187, %186 : vector<8x64xf32>
    %189 = arith.addf %148, %188 : vector<8x64xf32>
    %c4_i32_53 = arith.constant 4 : i32
    %190 = arith.muli %arg0, %c4_i32_53 : i32
    %c3_i32 = arith.constant 3 : i32
    %191 = arith.addi %190, %c3_i32 : i32
    %192 = vector.extract_strided_slice %61 {offsets = [24, 0], sizes = [8, 256], strides = [1, 1]} : vector<32x256xf32> to vector<8x256xf32>
    %193 = arith.truncf %181 : vector<8x64xf32> to vector<8x64xbf16>
    %cst_54 = arith.constant dense<0.000000e+00> : vector<8x256xf32>
    %194 = tpu.matmul %193, %63, %cst_54 {dimension_numbers = #tpu.dot_dimension_numbers<[1], [0], [0], [1], [0, 0, 1, 1], [], []>} : vector<8x64xbf16>, vector<64x256xbf16>, vector<8x256xf32> -> vector<8x256xf32>
    %195 = vector.broadcast %64 : vector<1x256xf32> to vector<8x256xf32>
    %196 = arith.addf %194, %195 : vector<8x256xf32>
    %197 = vector.extract_strided_slice %192 {offsets = [0, 0], sizes = [8, 64], strides = [1, 1]} : vector<8x256xf32> to vector<8x64xf32>
    %198 = vector.extract_strided_slice %196 {offsets = [0, 0], sizes = [8, 64], strides = [1, 1]} : vector<8x256xf32> to vector<8x64xf32>
    %199 = arith.addf %197, %198 : vector<8x64xf32>
    %200 = arith.negf %199 : vector<8x64xf32>
    %201 = math.exp %200 : vector<8x64xf32>
    %cst_55 = arith.constant 1.000000e+00 : f32
    %202 = vector.broadcast %cst_55 : f32 to vector<8x64xf32>
    %203 = arith.addf %202, %201 : vector<8x64xf32>
    %204 = arith.divf %202, %203 : vector<8x64xf32>
    %205 = vector.extract_strided_slice %192 {offsets = [0, 64], sizes = [8, 64], strides = [1, 1]} : vector<8x256xf32> to vector<8x64xf32>
    %206 = vector.extract_strided_slice %196 {offsets = [0, 64], sizes = [8, 64], strides = [1, 1]} : vector<8x256xf32> to vector<8x64xf32>
    %207 = arith.addf %205, %206 : vector<8x64xf32>
    %208 = arith.negf %207 : vector<8x64xf32>
    %209 = math.exp %208 : vector<8x64xf32>
    %cst_56 = arith.constant 1.000000e+00 : f32
    %210 = vector.broadcast %cst_56 : f32 to vector<8x64xf32>
    %211 = arith.addf %210, %209 : vector<8x64xf32>
    %212 = arith.divf %210, %211 : vector<8x64xf32>
    %213 = vector.extract_strided_slice %192 {offsets = [0, 128], sizes = [8, 64], strides = [1, 1]} : vector<8x256xf32> to vector<8x64xf32>
    %214 = vector.extract_strided_slice %196 {offsets = [0, 128], sizes = [8, 64], strides = [1, 1]} : vector<8x256xf32> to vector<8x64xf32>
    %215 = arith.mulf %204, %214 : vector<8x64xf32>
    %216 = arith.addf %213, %215 : vector<8x64xf32>
    %217 = math.tanh %216 : vector<8x64xf32>
    %cst_57 = arith.constant 1.000000e+00 : f32
    %218 = vector.broadcast %cst_57 : f32 to vector<8x64xf32>
    %219 = arith.subf %218, %212 : vector<8x64xf32>
    %220 = arith.mulf %219, %217 : vector<8x64xf32>
    %221 = arith.mulf %212, %181 : vector<8x64xf32>
    %222 = arith.addf %220, %221 : vector<8x64xf32>
    %223 = vector.broadcast %191 : i32 to vector<8x1xi32>
    %224 = arith.cmpi eq, %62, %223 : vector<8x1xi32>
    %225 = arith.extui %224 : vector<8x1xi1> to vector<8x1xi32>
    %226 = arith.sitofp %225 : vector<8x1xi32> to vector<8x1xf32>
    %227 = arith.subf %222, %189 : vector<8x64xf32>
    %228 = vector.broadcast %226 : vector<8x1xf32> to vector<8x64xf32>
    %229 = arith.mulf %228, %227 : vector<8x64xf32>
    %230 = arith.addf %189, %229 : vector<8x64xf32>
    %c0_58 = arith.constant 0 : index
    %c0_59 = arith.constant 0 : index
    %231 = vector.load %arg16[%c0_58, %c0_59] : memref<8x64xf32, #tpu.memory_space<vmem>>, vector<8x64xf32>
    tpu.vector_store %arg16[%c0_58, %c0_59], %222 {strides = array<i32>} : memref<8x64xf32, #tpu.memory_space<vmem>>, vector<8x64xf32>,
    %c0_60 = arith.constant 0 : index
    %c0_61 = arith.constant 0 : index
    %232 = vector.load %arg17[%c0_60, %c0_61] : memref<8x64xf32, #tpu.memory_space<vmem>>, vector<8x64xf32>
    tpu.vector_store %arg17[%c0_60, %c0_61], %230 {strides = array<i32>} : memref<8x64xf32, #tpu.memory_space<vmem>>, vector<8x64xf32>,
    %c1_i32_62 = arith.constant 1 : i32
    %233 = arith.cmpi eq, %arg0, %c1_i32_62 : i32
    %234 = arith.extui %233 : i1 to i32
    %c0_i32_63 = arith.constant 0 : i32
    %235 = arith.cmpi ne, %234, %c0_i32_63 : i32
    scf.if %235 {
      %236 = arith.truncf %230 : vector<8x64xf32> to vector<8x64xbf16>
      %c0_64 = arith.constant 0 : index
      %c0_65 = arith.constant 0 : index
      %237 = vector.load %arg11[%c0_64, %c0_65] : memref<64x32xbf16, #tpu.memory_space<vmem>>, vector<64x32xbf16>
      %cst_66 = arith.constant dense<0.000000e+00> : vector<8x32xf32>
      %238 = tpu.matmul %236, %237, %cst_66 {dimension_numbers = #tpu.dot_dimension_numbers<[1], [0], [0], [1], [0, 0, 1, 1], [], []>} : vector<8x64xbf16>, vector<64x32xbf16>, vector<8x32xf32> -> vector<8x32xf32>
      %c0_67 = arith.constant 0 : index
      %c0_68 = arith.constant 0 : index
      %239 = vector.load %arg12[%c0_67, %c0_68] : memref<1x32xf32, #tpu.memory_space<vmem>>, vector<1x32xf32>
      %240 = vector.broadcast %239 : vector<1x32xf32> to vector<8x32xf32>
      %241 = arith.addf %238, %240 : vector<8x32xf32>
      %cst_69 = arith.constant 0.000000e+00 : f32
      %242 = vector.broadcast %cst_69 : f32 to vector<8x32xf32>
      %243 = arith.maximumf %241, %242 : vector<8x32xf32>
      %cst_70 = arith.constant dense<0.000000e+00> : vector<8xf32>
      %244 = vector.multi_reduction <add>, %243, %cst_70 [1] : vector<8x32xf32> to vector<8xf32>
      %245 = vector.shape_cast %244 : vector<8xf32> to vector<8x1xf32>
      %cst_71 = arith.constant 3.200000e+01 : f32
      %246 = vector.broadcast %cst_71 : f32 to vector<8x1xf32>
      %247 = arith.divf %245, %246 : vector<8x1xf32>
      %248 = vector.broadcast %247 : vector<8x1xf32> to vector<8x32xf32>
      %249 = arith.subf %243, %248 : vector<8x32xf32>
      %250 = arith.mulf %249, %249 : vector<8x32xf32>
      %cst_72 = arith.constant dense<0.000000e+00> : vector<8xf32>
      %251 = vector.multi_reduction <add>, %250, %cst_72 [1] : vector<8x32xf32> to vector<8xf32>
      %252 = vector.shape_cast %251 : vector<8xf32> to vector<8x1xf32>
      %cst_73 = arith.constant 3.200000e+01 : f32
      %253 = vector.broadcast %cst_73 : f32 to vector<8x1xf32>
      %254 = arith.divf %252, %253 : vector<8x1xf32>
      %255 = vector.broadcast %247 : vector<8x1xf32> to vector<8x32xf32>
      %256 = arith.subf %243, %255 : vector<8x32xf32>
      %cst_74 = arith.constant 9.99999974E-6 : f32
      %257 = vector.broadcast %cst_74 : f32 to vector<8x1xf32>
      %258 = arith.addf %254, %257 : vector<8x1xf32>
      %259 = math.rsqrt %258 : vector<8x1xf32>
      %260 = vector.broadcast %259 : vector<8x1xf32> to vector<8x32xf32>
      %261 = arith.mulf %256, %260 : vector<8x32xf32>
      %262 = arith.truncf %261 : vector<8x32xf32> to vector<8x32xbf16>
      %c0_75 = arith.constant 0 : index
      %c0_76 = arith.constant 0 : index
      %263 = vector.load %arg13[%c0_75, %c0_76] : memref<32x5xbf16, #tpu.memory_space<vmem>>, vector<32x5xbf16>
      %cst_77 = arith.constant dense<0.000000e+00> : vector<8x5xf32>
      %264 = tpu.matmul %262, %263, %cst_77 {dimension_numbers = #tpu.dot_dimension_numbers<[1], [0], [0], [1], [0, 0, 1, 1], [], []>} : vector<8x32xbf16>, vector<32x5xbf16>, vector<8x5xf32> -> vector<8x5xf32>
      %c0_78 = arith.constant 0 : index
      %c0_79 = arith.constant 0 : index
      %265 = vector.load %arg14[%c0_78, %c0_79] : memref<1x5xf32, #tpu.memory_space<vmem>>, vector<1x5xf32>
      %266 = vector.broadcast %265 : vector<1x5xf32> to vector<8x5xf32>
      %267 = arith.addf %264, %266 : vector<8x5xf32>
      %c0_80 = arith.constant 0 : index
      %c0_81 = arith.constant 0 : index
      %268 = vector.load %arg15[%c0_80, %c0_81] : memref<8x5xf32, #tpu.memory_space<vmem>>, vector<8x5xf32>
      tpu.vector_store %arg15[%c0_80, %c0_81], %267 {strides = array<i32>} : memref<8x5xf32, #tpu.memory_space<vmem>>, vector<8x5xf32>,
    } else {
    }
    return
  }
  func.func @transform_0(%arg0: i32) -> (i32, i32) {
    %c0_i32 = arith.constant 0 : i32
    %c0_i32_0 = arith.constant 0 : i32
    return %arg0, %c0_i32 : i32, i32
  }
  func.func @transform_1(%arg0: i32) -> (i32, i32) {
    %c0_i32 = arith.constant 0 : i32
    %c0_i32_0 = arith.constant 0 : i32
    %c0_i32_1 = arith.constant 0 : i32
    return %c0_i32, %c0_i32_0 : i32, i32
  }
  func.func @transform_2(%arg0: i32) -> (i32, i32) {
    %c0_i32 = arith.constant 0 : i32
    %c0_i32_0 = arith.constant 0 : i32
    %c0_i32_1 = arith.constant 0 : i32
    return %c0_i32, %c0_i32_0 : i32, i32
  }
  func.func @transform_3(%arg0: i32) -> (i32, i32) {
    %c0_i32 = arith.constant 0 : i32
    %c0_i32_0 = arith.constant 0 : i32
    %c0_i32_1 = arith.constant 0 : i32
    return %c0_i32, %c0_i32_0 : i32, i32
  }
  func.func @transform_4(%arg0: i32) -> (i32, i32) {
    %c0_i32 = arith.constant 0 : i32
    %c0_i32_0 = arith.constant 0 : i32
    %c0_i32_1 = arith.constant 0 : i32
    return %c0_i32, %c0_i32_0 : i32, i32
  }
  func.func @transform_5(%arg0: i32) -> (i32, i32) {
    %c0_i32 = arith.constant 0 : i32
    %c0_i32_0 = arith.constant 0 : i32
    %c0_i32_1 = arith.constant 0 : i32
    return %c0_i32, %c0_i32_0 : i32, i32
  }
  func.func @transform_6(%arg0: i32) -> (i32, i32) {
    %c0_i32 = arith.constant 0 : i32
    %c0_i32_0 = arith.constant 0 : i32
    %c0_i32_1 = arith.constant 0 : i32
    return %c0_i32, %c0_i32_0 : i32, i32
  }
  func.func @transform_7(%arg0: i32) -> (i32, i32) {
    %c0_i32 = arith.constant 0 : i32
    %c0_i32_0 = arith.constant 0 : i32
    %c0_i32_1 = arith.constant 0 : i32
    return %c0_i32, %c0_i32_0 : i32, i32
  }
  func.func @transform_8(%arg0: i32) -> (i32, i32) {
    %c0_i32 = arith.constant 0 : i32
    %c0_i32_0 = arith.constant 0 : i32
    %c0_i32_1 = arith.constant 0 : i32
    return %c0_i32, %c0_i32_0 : i32, i32
  }
  func.func @transform_9(%arg0: i32) -> (i32, i32) {
    %c0_i32 = arith.constant 0 : i32
    %c0_i32_0 = arith.constant 0 : i32
    %c0_i32_1 = arith.constant 0 : i32
    return %c0_i32, %c0_i32_0 : i32, i32
  }
  func.func @transform_10(%arg0: i32) -> (i32, i32) {
    %c0_i32 = arith.constant 0 : i32
    %c0_i32_0 = arith.constant 0 : i32
    %c0_i32_1 = arith.constant 0 : i32
    return %c0_i32, %c0_i32_0 : i32, i32
  }
  func.func @transform_11(%arg0: i32) -> (i32, i32) {
    %c0_i32 = arith.constant 0 : i32
    %c0_i32_0 = arith.constant 0 : i32
    %c0_i32_1 = arith.constant 0 : i32
    return %c0_i32, %c0_i32_0 : i32, i32
  }
  func.func @transform_12(%arg0: i32) -> (i32, i32) {
    %c0_i32 = arith.constant 0 : i32
    %c0_i32_0 = arith.constant 0 : i32
    %c0_i32_1 = arith.constant 0 : i32
    return %c0_i32, %c0_i32_0 : i32, i32
  }
  func.func @transform_13(%arg0: i32) -> (i32, i32) {
    %c0_i32 = arith.constant 0 : i32
    %c0_i32_0 = arith.constant 0 : i32
    %c0_i32_1 = arith.constant 0 : i32
    return %c0_i32, %c0_i32_0 : i32, i32
  }
  func.func @transform_14(%arg0: i32) -> (i32, i32) {
    %c0_i32 = arith.constant 0 : i32
    %c0_i32_0 = arith.constant 0 : i32
    %c0_i32_1 = arith.constant 0 : i32
    return %c0_i32, %c0_i32_0 : i32, i32
  }
}

</mosaic_0001>

<bundles_post_ra>
// kernel: gru_classifier_forward.1
= control target key start
LH: loop header
LB: loop body
LE: loop exit
PB: predicated region body
PF: predicated region fallthrough
CT: control target
= control target key end

     0   :  { %s1796_s29 = smov 0   ;;  %s2170_s0 = inlined_call_operand.vmem [shape: f32[64,16], index: 0, kind: input, shape index: {}]   ;;  %s2171_s1 = inlined_call_operand.vmem [shape: s32[8,1], index: 1, kind: input, shape index: {}]   ;;  %s2172_s2 = inlined_call_operand.vmem [shape: bf16[16,128], index: 2, kind: input, shape index: {}]   ;;  %s2173_s3 = inlined_call_operand.vmem [shape: f32[1,128], index: 3, kind: input, shape index: {}]   ;;  %s2174_s4 = inlined_call_operand.vmem [shape: bf16[128,64], index: 4, kind: input, shape index: {}]   ;;  %s2175_s5 = inlined_call_operand.vmem [shape: f32[1,64], index: 5, kind: input, shape index: {}]   ;;  %s2176_s6 = inlined_call_operand.vmem [shape: bf16[64,256], index: 6, kind: input, shape index: {}]   ;;  %s2177_s7 = inlined_call_operand.vmem [shape: f32[1,256], index: 7, kind: input, shape index: {}]   ;;  %s2178_s8 = inlined_call_operand.vmem [shape: bf16[64,256], index: 8, kind: input, shape index: {}]   ;;  %s2179_s9 = inlined_call_operand.vmem [shape: f32[1,256], index: 9, kind: input, shape index: {}]   ;;  %s2180_s10 = inlined_call_operand.vmem [shape: bf16[64,32], index: 10, kind: input, shape index: {}]   ;;  %s2181_s11 = inlined_call_operand.vmem [shape: f32[1,32], index: 11, kind: input, shape index: {}]   ;;  %s2182_s12 = inlined_call_operand.vmem [shape: bf16[32,5], index: 12, kind: input, shape index: {}]   ;;  %s2183_s13 = inlined_call_operand.vmem [shape: f32[1,5], index: 13, kind: input, shape index: {}]   ;;  %s2184_s14 = inlined_call_operand.vmem [shape: f32[8,5], index: 14, kind: output, shape index: {}]  }
   0x1 LB: > { %s1802_s30 = sadd.s32 4294967295, %s1712_s29   ;;  %p1449_p0 = scmp.ge.s32.totalorder %s1712_s29, 1  ;;  %s1712_s29 = sphi %s1796_s29, %s24_s29  }
   0x2   : > { %p408_p1 = scmp.lt.s32.totalorder %s1712_s29, 3 }
   0x4   : > { %p409_p2 = pnand %p1449_p0, %p408_p1 }
   0x5   : > { %s1807_s15 = sshll.u32 (!%p409_p2), %s1802_s30, 2  ;;  %p1452_p4 = scmp.ne.s32.totalorder (!%p409_p2), %s1802_s30, 0 }
   0x6   : > { %412 = sbr.rel (%p409_p2) target bundleno = 3133 (0xc3d), region = 76  ;;  %p450_p3 = scmp.lt.s32.totalorder (!%p409_p2), %s1807_s15, 7 }
   0xb   : > { %s451_s16 = scalar_select %p450_p3, %s1807_s15, 7 }
   0xc   : > { %459 = sbr.rel (%p1452_p4) target bundleno = 20 (0x14), region = 80 }
   0xd   : > { %s1451_s17 = sshll.u32 %s451_s16, 3 }
   0xe   : > { %s453_s20 = scalar_lea.vmem %s2170_s0, %s1451_s17 }
  0x11   : > { %vm460_vm0 = vcmask 523264   ;;  %v1714_v0 = vmov 0.0  }
  0x12   : > { %461 = vst.msk [vmem:[#allocation2] sm:$0xff] %vm460_vm0, %v1714_v0 }
  0x13   : > { %462 = vst.msk [vmem:[#allocation3] sm:$0xff] %vm460_vm0, %v1714_v0 }
  0x14 PF: > { %v1605_v1 = vld [vmem:[%s2172_s2] sm:$0xff]  ;;  %v464_v3 = vld [vmem:[%s453_s20 + $0x8] sm:$0xff]  ;;  %vm481_vm1 = vcmask 130048   ;;  %v465_v5 = vld [vmem:[%s453_s20 + $0x10] sm:$0xff]  ;;  %v1715_v21 = vmov 128.0   ;;  %vm691_vm15 = vcmask 523264  }
  0x15   : > { %v463_v2 = vld [vmem:[%s453_s20] sm:$0xff]  ;;  %495 = vmatpush.bf16.msra.mxu0 %v1605_v1  ;;  %v466_v6 = vld [vmem:[%s453_s20 + $0x18] sm:$0xff]  ;;  %1656 = vrcp.f32 %v1715_v21  ;;  %v1612_v45 = vld [vmem:[%s2174_s4 + $0x30] sm:$0xff]  ;;  %s1717_s26 = smov 64   ;;  %s1030_s24 = sadd.s32 1, %s1807_s15 }
  0x16   : > { %v467_v4 = vpack.c.bf16 %v464_v3, %v463_v2  ;;  %v468_v7 = vpack.c.bf16 %v466_v6, %v465_v5  ;;  %v1654_v8 = vld [vmem:[%s2173_s3] ss:$0 sm:$0xff]  ;;  %v1613_v44 = vld [vmem:[%s2174_s4 + $0x38] sm:$0xff]  ;;  %v1611_v46 = vld [vmem:[%s2174_s4 + $0x28] sm:$0xff]  ;;  %s1115_s25 = sadd.s32 2, %s1807_s15  ;;  %s1200_s27 = sadd.s32 3, %s1807_s15 }
  0x17   : > { %668 = vmatpush.bf16.msra.mxu1 %v1613_v44  ;;  %v1610_v47 = vld [vmem:[%s2174_s4 + $0x20] sm:$0xff]  ;;  %v1609_v48 = vld [vmem:[%s2174_s4 + $0x18] sm:$0xff]  ;;  %v1608_v49 = vld [vmem:[%s2174_s4 + $0x10] sm:$0xff]  ;;  %p1576_p5 = scmp.ne.s32.totalorder %s1802_s30, 1 }
  0x18   : > { %1457 = vmatmul.msk.bf16.vlgmr.msra.gmra.mxu0 %vm481_vm1, %v467_v4  ;;  %v1607_v50 = vld [vmem:[%s2174_s4 + $0x8] sm:$0xff]  ;;  %v1606_v51 = vld [vmem:[%s2174_s4] sm:$0xff] }
  0x1b   : > { %v1657_v22 = vpop.eup %1656  ;;  %669 = vmatpush.bf16.msra.mxu1 %v1612_v45 }
  0x1c   : > { %v520_v23 = vmul.f32 128.0, %v1657_v22  ;;  %vm524_vm2 = vweird.f32 %v1657_v22 }
  0x1e   : > { %v521_v24 = vsub.f32 1.0, %v520_v23 }
  0x1f   : > { %670 = vmatpush.bf16.msra.mxu1 %v1611_v46 }
  0x20   : > { %v522_v25 = vmul.f32 %v1657_v22, %v521_v24 }
  0x22   : > { %v523_v26 = vadd.f32 %v1657_v22, %v522_v25 }
  0x23   : > { %671 = vmatpush.bf16.msra.mxu1 %v1610_v47 }
  0x24   : > { %v525_v27 = vsel %vm524_vm2, %v1657_v22, %v523_v26 }
  0x27   : > { %672 = vmatpush.bf16.msra.mxu1 %v1609_v48 }
  0x28   : > { %1458 = vmatmul.msk.bf16.gmra.mxu0 %vm481_vm1, %v468_v7 }
  0x2b   : > { %673 = vmatpush.bf16.msra.mxu1 %v1608_v49 }
  0x2f   : > { %674 = vmatpush.bf16.msra.mxu1 %v1607_v50 }
  0x33   : > { %675 = vmatpush.bf16.msra.mxu1 %v1606_v51  ;;  %v1716_v51 = vmov 64.0  }
  0x95   : > { %v497_v9 = vpop.f32.mrf.mxu0 }
  0x96   : > { %v498_v10 = vadd.f32 %v1654_v8, %v497_v9 }
  0x98   : > { %v507_v11 = vmax.f32 %v498_v10, 0.0 }
  0x9a   : > { %511 = vadd.xlane.f32.xlu0 %v507_v11 }
  0x9d   : > { %v499_v12 = vpop.f32.mrf.mxu0 }
  0x9e   : > { %v500_v13 = vadd.f32 %v1654_v8, %v499_v12 }
  0xa0   : > { %v508_v14 = vmax.f32 %v500_v13, 0.0 }
  0xa2   : > { %513 = vadd.xlane.f32.xlu0 %v508_v14 }
  0xa5   : > { %v502_v15 = vpop.f32.mrf.mxu0 }
  0xa6   : > { %v503_v16 = vadd.f32 %v1654_v8, %v502_v15 }
  0xa8   : > { %v509_v17 = vmax.f32 %v503_v16, 0.0 }
  0xaa   : > { %515 = vadd.xlane.f32.xlu1 %v509_v17 }
  0xad   : > { %v504_v18 = vpop.f32.mrf.mxu0 }
  0xae   : > { %v505_v19 = vadd.f32 %v1654_v8, %v504_v18 }
  0xb0   : > { %v510_v20 = vmax.f32 %v505_v19, 0.0 }
  0xb2   : > { %517 = vadd.xlane.f32.xlu1 %v510_v20 }
 0x10d   : > { %v512_v28 = vpop.xlane.xlu0 %511 }
 0x10e   : > { %v526_v29 = vmul.f32 %v525_v27, %v512_v28 }
 0x110   : > { %v1821_v30 = vsub.f32 %v507_v11, %v526_v29 }
 0x112   : > { %v534_v31 = vmul.f32 %v1821_v30, %v1821_v30 }
 0x114   : > { %538 = vadd.xlane.f32.xlu2 %v534_v31 }
 0x115   : > { %v514_v32 = vpop.xlane.xlu0 %513 }
 0x116   : > { %v527_v33 = vmul.f32 %v525_v27, %v514_v32 }
 0x118   : > { %v1825_v34 = vsub.f32 %v508_v14, %v527_v33 }
 0x11a   : > { %v535_v35 = vmul.f32 %v1825_v34, %v1825_v34 }
 0x11c   : > { %540 = vadd.xlane.f32.xlu2 %v535_v35 }
 0x11d   : > { %v516_v36 = vpop.xlane.xlu1 %515 }
 0x11e   : > { %v528_v37 = vmul.f32 %v525_v27, %v516_v36 }
 0x120   : > { %v1829_v38 = vsub.f32 %v509_v17, %v528_v37 }
 0x122   : > { %v536_v39 = vmul.f32 %v1829_v38, %v1829_v38 }
 0x124   : > { %542 = vadd.xlane.f32.xlu0 %v536_v39 }
 0x125   : > { %v518_v40 = vpop.xlane.xlu1 %517 }
 0x126   : > { %v529_v41 = vmul.f32 %v525_v27, %v518_v40 }
 0x128   : > { %v1833_v42 = vsub.f32 %v510_v20, %v529_v41 }
 0x12a   : > { %v537_v43 = vmul.f32 %v1833_v42, %v1833_v42 }
 0x12c   : > { %544 = vadd.xlane.f32.xlu1 %v537_v43 }
 0x187   : > { %v539_v52 = vpop.xlane.xlu2 %538 }
 0x188   : > { %v546_v53 = vmul.f32 %v539_v52, %v525_v27 }
 0x18a   : > { %v550_v54 = vadd.f32 1e-05, %v546_v53 }
 0x18c   : > { %1658 = vrsqrt.f32 %v550_v54  ;;  %vm560_vm4 = vweird.f32 %v550_v54 }
 0x18f   : > { %v541_v55 = vpop.xlane.xlu2 %540 }
 0x190   : > { %v547_v56 = vmul.f32 %v541_v55, %v525_v27 }
 0x192   : > { %v1659_v57 = vpop.eup %1658  ;;  %v551_v58 = vadd.f32 1e-05, %v547_v56 }
 0x193   : > { %v555_v59 = vmul.f32 %v1659_v57, %v550_v54  ;;  %vm561_vm3 = vweird.f32 %v1659_v57 }
 0x194   : > { %1660 = vrsqrt.f32 %v551_v58  ;;  %vm562_vm6 = vmor %vm560_vm4, %vm561_vm3  ;;  %vm570_vm7 = vweird.f32 %v551_v58 }
 0x195   : > { %v556_v60 = vmul.f32 %v1659_v57, %v555_v59 }
 0x197   : > { %v557_v61 = vmul.f32 0.5, %v556_v60  ;;  %v543_v62 = vpop.xlane.xlu0 %542 }
 0x198   : > { %v548_v63 = vmul.f32 %v543_v62, %v525_v27 }
 0x199   : > { %v558_v2 = vsub.f32 1.5, %v557_v61 }
 0x19a   : > { %v1661_v0 = vpop.eup %1660  ;;  %v552_v1 = vadd.f32 1e-05, %v548_v63 }
 0x19b   : > { %v565_v3 = vmul.f32 %v1661_v0, %v551_v58  ;;  %v559_v7 = vmul.f32 %v1659_v57, %v558_v2  ;;  %vm571_vm5 = vweird.f32 %v1661_v0 }
 0x19c   : > { %1662 = vrsqrt.f32 %v552_v1  ;;  %vm572_vm8 = vmor %vm570_vm7, %vm571_vm5  ;;  %vm580_vm10 = vweird.f32 %v552_v1 }
 0x19d   : > { %v566_v4 = vmul.f32 %v1661_v0, %v565_v3  ;;  %v563_v13 = vsel %vm562_vm6, %v1659_v57, %v559_v7 }
 0x19e   : > { %v594_v17 = vmul.f32 %v563_v13, %v1821_v30 }
 0x19f   : > { %v567_v5 = vmul.f32 0.5, %v566_v4  ;;  %v545_v6 = vpop.xlane.xlu1 %544 }
 0x1a0   : > { %v549_v8 = vmul.f32 %v545_v6, %v525_v27 }
 0x1a1   : > { %v568_v9 = vsub.f32 1.5, %v567_v5 }
 0x1a2   : > { %v1663_v10 = vpop.eup %1662  ;;  %v553_v11 = vadd.f32 1e-05, %v549_v8 }
 0x1a3   : > { %v575_v12 = vmul.f32 %v1663_v10, %v552_v1  ;;  %v569_v14 = vmul.f32 %v1661_v0, %v568_v9  ;;  %vm581_vm9 = vweird.f32 %v1663_v10 }
 0x1a4   : > { %1664 = vrsqrt.f32 %v553_v11  ;;  %vm582_vm12 = vmor %vm580_vm10, %vm581_vm9  ;;  %vm590_vm13 = vweird.f32 %v553_v11 }
 0x1a5   : > { %v576_v15 = vmul.f32 %v1663_v10, %v575_v12  ;;  %v573_v16 = vsel %vm572_vm8, %v1661_v0, %v569_v14  ;;  %1666 = vrcp.f32 %v1716_v51  ;;  %v1554_v14 = vld [vmem:[%s2178_s8 + $0x30] sm:$0xf]  ;;  %v897_v51 = vld [vmem:[#allocation2] sm:$0xff] }
 0x1a6   : > { %v595_v18 = vmul.f32 %v573_v16, %v1825_v34  ;;  %v1655_v34 = vld [vmem:[%s2175_s5] ss:$0 sm:$0xff]  ;;  %v1517_v16 = vld [vmem:[%s2176_s6 + $0x30] sm:$0xf] }
 0x1a7   : > { %v577_v19 = vmul.f32 0.5, %v576_v15  ;;  %v1629_v15 = vld [vmem:[%s2178_s8 + $0x34] sm:$0xf0] }
 0x1a8   : > { %v598_v20 = vpack.c.bf16 %v595_v18, %v594_v17  ;;  %v1907_v17 = vor.u32 %v1629_v15, %v1554_v14  ;;  %v1621_v18 = vld [vmem:[%s2176_s6 + $0x34] sm:$0xf0]  ;;  %v1540_v14 = vld [vmem:[%s2178_s8 + $0x18] sm:$0xf0] }
 0x1a9   : > { %v578_v22 = vsub.f32 1.5, %v577_v19  ;;  %v1620_v19 = vld [vmem:[%s2176_s6 + $0x34] sm:$0xf] }
 0x1aa   : > { %v1665_v21 = vpop.eup %1664  ;;  %676 = vmatmul.bf16.vlgmr.msra.gmra.mxu1 %v598_v20  ;;  %v1519_v20 = vld [vmem:[%s2176_s6 + $0x38] sm:$0xf0]  ;;  %953 = vmatpush.bf16.msrb.mxu0 %v1907_v17 }
 0x1ab   : > { %v585_v23 = vmul.f32 %v1665_v21, %v553_v11  ;;  %v579_v26 = vmul.f32 %v1663_v10, %v578_v22  ;;  %vm591_vm11 = vweird.f32 %v1665_v21  ;;  %v1667_v52 = vpop.eup %1666  ;;  %v1522_v22 = vor.u32 %v1620_v19, %v1519_v20  ;;  %1127 = vmatpush.bf16.msrb.mxu1 %v1907_v17  ;;  %v1622_v19 = vld [vmem:[%s2178_s8 + $0x4] sm:$0xf]  ;;  %v1532_v20 = vld [vmem:[%s2178_s8 + $0x8] sm:$0xf0] }
 0x1ac   : > { %vm592_vm14 = vmor %vm590_vm13, %vm591_vm11  ;;  %v705_v53 = vmul.f32 64.0, %v1667_v52  ;;  %vm709_vm0 = vweird.f32 %v1667_v52 }
 0x1ad   : > { %v586_v24 = vmul.f32 %v1665_v21, %v585_v23  ;;  %v583_v28 = vsel %vm582_vm12, %v1663_v10, %v579_v26  ;;  %v1546_v23 = vld [vmem:[%s2178_s8 + $0x20] sm:$0xf]  ;;  %872 = vmatpush.bf16.msra.mxu3 %v1522_v22  ;;  %v1535_v22 = vor.u32 %v1622_v19, %v1532_v20 }
 0x1ae   : > { %v596_v31 = vmul.f32 %v583_v28, %v1829_v38  ;;  %v706_v54 = vsub.f32 1.0, %v705_v53  ;;  %v1618_v28 = vld [vmem:[%s2176_s6 + $0x24] sm:$0xf]  ;;  %v1985_v53 = vpack.c.bf16 %v897_v51, %v897_v51 }
 0x1af   : > { %v587_v25 = vmul.f32 0.5, %v586_v24  ;;  %v1627_v24 = vld [vmem:[%s2178_s8 + $0x24] sm:$0xf0] }
 0x1b0   : > { %v707_v55 = vmul.f32 %v1667_v52, %v706_v54  ;;  %v1929_v26 = vor.u32 %v1627_v24, %v1546_v23 }
 0x1b1   : > { %v588_v27 = vsub.f32 1.5, %v587_v25  ;;  %v1509_v25 = vld [vmem:[%s2176_s6 + $0x20] sm:$0xf] }
 0x1b2   : > { %v708_v56 = vadd.f32 %v1667_v52, %v707_v55  ;;  %954 = vmatpush.bf16.msrb.mxu0 %v1929_v26  ;;  %1128 = vmatpush.bf16.msrb.mxu1 %v1929_v26 }
 0x1b3   : > { %v589_v29 = vmul.f32 %v1665_v21, %v588_v27  ;;  %v1619_v27 = vld [vmem:[%s2176_s6 + $0x24] sm:$0xf0] }
 0x1b4   : > { %v1872_v57 = vsel %vm709_vm0, %v1667_v52, %v708_v56 }
 0x1b5   : > { %v593_v30 = vsel %vm592_vm14, %v1665_v21, %v589_v29  ;;  %v1518_v21 = vor.u32 %v1621_v18, %v1517_v16  ;;  %v1511_v29 = vld [vmem:[%s2176_s6 + $0x28] sm:$0xf0] }
 0x1b6   : > { %v597_v32 = vmul.f32 %v593_v30, %v1833_v42  ;;  %v1510_v30 = vor.u32 %v1619_v27, %v1509_v25 }
 0x1b7   : > { %853 = vmatpush.bf16.msra.mxu2 %v1518_v21 }
 0x1b8   : > { %v599_v33 = vpack.c.bf16 %v597_v32, %v596_v31  ;;  %v1514_v31 = vor.u32 %v1618_v28, %v1511_v29  ;;  %v1538_v32 = vld [vmem:[%s2178_s8 + $0x10] sm:$0xf] }
 0x1ba   : > { %681 = vmatmul.bf16.gmra.mxu1 %v599_v33  ;;  %873 = vmatpush.bf16.msra.mxu3 %v1514_v31  ;;  %v1625_v33 = vld [vmem:[%s2178_s8 + $0x14] sm:$0xf0] }
 0x1bb   : > { %854 = vmatpush.bf16.msra.mxu2 %v1510_v30 }
 0x227   : > { %v677_v35 = vpop.f32.mrf.mxu1 }
 0x228   : > { %v678_v36 = vadd.f32 %v1655_v34, %v677_v35  ;;  %v1951_v35 = vor.u32 %v1625_v33, %v1538_v32 }
 0x22a   : > { %v687_v37 = vmax.f32 %v678_v36, 0.0  ;;  %v1617_v36 = vld [vmem:[%s2176_s6 + $0x14] sm:$0xf0]  ;;  %955 = vmatpush.bf16.msrb.mxu0 %v1951_v35  ;;  %1129 = vmatpush.bf16.msrb.mxu1 %v1951_v35 }
 0x22c   : > { %v692_v39 = vsel %vm691_vm15, %v687_v37, 0.0 }
 0x22d   : > { %693 = vadd.xlane.f32.xlu2 %v692_v39  ;;  %v1503_v39 = vld [vmem:[%s2176_s6 + $0x18] sm:$0xf0] }
 0x22f   : > { %v679_v40 = vpop.f32.mrf.mxu1 }
 0x230   : > { %v680_v41 = vadd.f32 %v1655_v34, %v679_v40 }
 0x232   : > { %v688_v43 = vmax.f32 %v680_v41, 0.0 }
 0x234   : > { %v695_v38 = vsel %vm691_vm15, %v688_v43, 0.0 }
 0x235   : > { %696 = vadd.xlane.f32.xlu0 %v695_v38  ;;  %v1615_v38 = vld [vmem:[%s2176_s6 + $0x4] sm:$0xf0] }
 0x237   : > { %v682_v42 = vpop.f32.mrf.mxu1 }
 0x238   : > { %v683_v44 = vadd.f32 %v1655_v34, %v682_v42  ;;  %v1614_v42 = vld [vmem:[%s2176_s6 + $0x4] sm:$0xf] }
 0x23a   : > { %v689_v45 = vmax.f32 %v683_v44, 0.0 }
 0x23c   : > { %v698_v46 = vsel %vm691_vm15, %v689_v45, 0.0 }
 0x23d   : > { %699 = vadd.xlane.f32.xlu1 %v698_v46  ;;  %v1530_v46 = vld [vmem:[%s2178_s8] sm:$0xf] }
 0x23f   : > { %v684_v47 = vpop.f32.mrf.mxu1 }
 0x240   : > { %v685_v48 = vadd.f32 %v1655_v34, %v684_v47  ;;  %v1501_v34 = vld [vmem:[%s2176_s6 + $0x10] sm:$0xf]  ;;  %v1623_v47 = vld [vmem:[%s2178_s8 + $0x4] sm:$0xf0] }
 0x241   : > { %v1502_v40 = vor.u32 %v1617_v36, %v1501_v34 }
 0x242   : > { %v690_v49 = vmax.f32 %v685_v48, 0.0 }
 0x243   : > { %855 = vmatpush.bf16.msra.mxu2 %v1502_v40 }
 0x244   : > { %v701_v50 = vsel %vm691_vm15, %v690_v49, 0.0 }
 0x245   : > { %702 = vadd.xlane.f32.xlu2 %v701_v50 }
 0x2a0   : > { %v694_v58 = vpop.xlane.xlu2 %693 }
 0x2a1   : > { %v711_v59 = vmul.f32 %v1872_v57, %v694_v58 }
 0x2a3   : > { %v1875_v60 = vsub.f32 %v687_v37, %v711_v59  ;;  %v1616_v37 = vld [vmem:[%s2176_s6 + $0x14] sm:$0xf] }
 0x2a4   : > { %v1506_v41 = vor.u32 %v1616_v37, %v1503_v39 }
 0x2a5   : > { %v719_v61 = vmul.f32 %v1875_v60, %v1875_v60 }
 0x2a6   : > { %874 = vmatpush.bf16.msra.mxu3 %v1506_v41 }
 0x2a7   : > { %v723_v62 = vsel %vm691_vm15, %v719_v61, 0.0 }
 0x2a8   : > { %724 = vadd.xlane.f32.xlu0 %v723_v62  ;;  %v697_v63 = vpop.xlane.xlu0 %696  ;;  %v1628_v62 = vld [vmem:[%s2178_s8 + $0x34] sm:$0xf] }
 0x2a9   : > { %v712_v0 = vmul.f32 %v1872_v57, %v697_v63  ;;  %v1556_v63 = vld [vmem:[%s2178_s8 + $0x38] sm:$0xf0] }
 0x2ab   : > { %v1881_v1 = vsub.f32 %v688_v43, %v712_v0  ;;  %v1493_v43 = vld [vmem:[%s2176_s6] sm:$0xf]  ;;  %v1626_v0 = vld [vmem:[%s2178_s8 + $0x24] sm:$0xf] }
 0x2ac   : > { %v1494_v44 = vor.u32 %v1615_v38, %v1493_v43 }
 0x2ad   : > { %v720_v2 = vmul.f32 %v1881_v1, %v1881_v1 }
 0x2ae   : > { %856 = vmatpush.bf16.msra.mxu2 %v1494_v44 }
 0x2af   : > { %v726_v3 = vsel %vm691_vm15, %v720_v2, 0.0  ;;  %v1559_v2 = vor.u32 %v1628_v62, %v1556_v63 }
 0x2b0   : > { %v700_v4 = vpop.xlane.xlu1 %699  ;;  %727 = vadd.xlane.f32.xlu1 %v726_v3  ;;  %v1548_v3 = vld [vmem:[%s2178_s8 + $0x28] sm:$0xf0] }
 0x2b1   : > { %v713_v5 = vmul.f32 %v1872_v57, %v700_v4 }
 0x2b2   : > { %966 = vmatpush.bf16.msrb.mxu2 %v1559_v2 }
 0x2b3   : > { %v1887_v6 = vsub.f32 %v689_v45, %v713_v5  ;;  %v1495_v45 = vld [vmem:[%s2176_s6 + $0x8] sm:$0xf0]  ;;  %v1551_v5 = vor.u32 %v1626_v0, %v1548_v3 }
 0x2b4   : > { %v1498_v48 = vor.u32 %v1614_v42, %v1495_v45 }
 0x2b5   : > { %v721_v7 = vmul.f32 %v1887_v6, %v1887_v6 }
 0x2b6   : > { %875 = vmatpush.bf16.msra.mxu3 %v1498_v48  ;;  %967 = vmatpush.bf16.msrb.mxu2 %v1551_v5 }
 0x2b7   : > { %v729_v8 = vsel %vm691_vm15, %v721_v7, 0.0 }
 0x2b8   : > { %v703_v9 = vpop.xlane.xlu2 %702  ;;  %730 = vadd.xlane.f32.xlu2 %v729_v8 }
 0x2b9   : > { %v714_v10 = vmul.f32 %v1872_v57, %v703_v9 }
 0x2ba   : > { %1042 = vmatpush.bf16.msrb.mxu3 %v1907_v17 }
 0x2bb   : > { %v1893_v11 = vsub.f32 %v690_v49, %v714_v10  ;;  %v1982_v49 = vor.u32 %v1623_v47, %v1530_v46 }
 0x2bd   : > { %v722_v12 = vmul.f32 %v1893_v11, %v1893_v11  ;;  %956 = vmatpush.bf16.msrb.mxu0 %v1982_v49  ;;  %1130 = vmatpush.bf16.msrb.mxu1 %v1982_v49 }
 0x2be   : > { %1043 = vmatpush.bf16.msrb.mxu3 %v1929_v26 }
 0x2bf   : > { %v732_v13 = vsel %vm691_vm15, %v722_v12, 0.0 }
 0x2c0   : > { %733 = vadd.xlane.f32.xlu0 %v732_v13  ;;  %1560 = vmatmul.msk.bf16.vlgmr.msrb.gmra.mxu0 %vm691_vm15, %v1985_v53  ;;  %v1624_v13 = vld [vmem:[%s2178_s8 + $0x14] sm:$0xf] }
 0x2c1   : > { %1055 = vmatpush.bf16.msra.mxu0 %v1559_v2  ;;  %v1543_v18 = vor.u32 %v1624_v13, %v1540_v14 }
 0x2c2   : > { %1044 = vmatpush.bf16.msrb.mxu3 %v1951_v35 }
 0x2c3   : > { %968 = vmatpush.bf16.msrb.mxu2 %v1543_v18 }
 0x2c5   : > { %1056 = vmatpush.bf16.msra.mxu0 %v1551_v5 }
 0x2c6   : > { %1045 = vmatpush.bf16.msrb.mxu3 %v1982_v49 }
 0x2c7   : > { %969 = vmatpush.bf16.msrb.mxu2 %v1535_v22 }
 0x2c9   : > { %1057 = vmatpush.bf16.msra.mxu0 %v1543_v18 }
 0x2cd   : > { %1058 = vmatpush.bf16.msra.mxu0 %v1535_v22 }
 0x2d0   : > { %1005 = vrot.lane.b32.xlu2 %v897_v51, %s1717_s26 }
 0x2d1   : > { %1225 = vmatpush.bf16.msrb.mxu0 %v1559_v2 }
 0x2d5   : > { %1226 = vmatpush.bf16.msrb.mxu0 %v1551_v5 }
 0x2d9   : > { %1227 = vmatpush.bf16.msrb.mxu0 %v1543_v18 }
 0x2dd   : > { %1228 = vmatpush.bf16.msrb.mxu0 %v1535_v22 }
 0x31b   : > { %v725_v50 = vpop.xlane.xlu0 %724 }
 0x31c   : > { %v735_v52 = vmul.f32 %v725_v50, %v1872_v57 }
 0x31e   : > { %v739_v54 = vadd.f32 1e-05, %v735_v52 }
 0x320   : > { %1668 = vrsqrt.f32 %v739_v54  ;;  %vm749_vm2 = vweird.f32 %v739_v54 }
 0x323   : > { %v728_v55 = vpop.xlane.xlu1 %727 }
 0x324   : > { %v736_v56 = vmul.f32 %v728_v55, %v1872_v57 }
 0x326   : > { %v1669_v58 = vpop.eup %1668  ;;  %v740_v59 = vadd.f32 1e-05, %v736_v56 }
 0x327   : > { %v744_v61 = vmul.f32 %v1669_v58, %v739_v54  ;;  %vm750_vm1 = vweird.f32 %v1669_v58 }
 0x328   : > { %1670 = vrsqrt.f32 %v740_v59  ;;  %vm751_vm4 = vmor %vm749_vm2, %vm750_vm1  ;;  %vm759_vm5 = vweird.f32 %v740_v59 }
 0x329   : > { %v745_v4 = vmul.f32 %v1669_v58, %v744_v61 }
 0x32b   : > { %v746_v7 = vmul.f32 0.5, %v745_v4  ;;  %v731_v8 = vpop.xlane.xlu2 %730 }
 0x32c   : > { %v737_v9 = vmul.f32 %v731_v8, %v1872_v57 }
 0x32d   : > { %v747_v15 = vsub.f32 1.5, %v746_v7 }
 0x32e   : > { %v1671_v10 = vpop.eup %1670  ;;  %v741_v12 = vadd.f32 1e-05, %v737_v9 }
 0x32f   : > { %v754_v16 = vmul.f32 %v1671_v10, %v740_v59  ;;  %v748_v23 = vmul.f32 %v1669_v58, %v747_v15  ;;  %vm760_vm3 = vweird.f32 %v1671_v10 }
 0x330   : > { %1672 = vrsqrt.f32 %v741_v12  ;;  %vm761_vm6 = vmor %vm759_vm5, %vm760_vm3  ;;  %vm769_vm8 = vweird.f32 %v741_v12 }
 0x331   : > { %v755_v21 = vmul.f32 %v1671_v10, %v754_v16  ;;  %v752_v33 = vsel %vm751_vm4, %v1669_v58, %v748_v23 }
 0x332   : > { %v783_v37 = vmul.f32 %v752_v33, %v1875_v60 }
 0x333   : > { %v756_v24 = vmul.f32 0.5, %v755_v21  ;;  %v734_v25 = vpop.xlane.xlu0 %733 }
 0x334   : > { %v738_v27 = vmul.f32 %v734_v25, %v1872_v57 }
 0x335   : > { %v757_v28 = vsub.f32 1.5, %v756_v24 }
 0x336   : > { %v1673_v29 = vpop.eup %1672  ;;  %v742_v30 = vadd.f32 1e-05, %v738_v27 }
 0x337   : > { %v758_v31 = vmul.f32 %v1671_v10, %v757_v28  ;;  %v764_v32 = vmul.f32 %v1673_v29, %v741_v12  ;;  %vm770_vm7 = vweird.f32 %v1673_v29 }
 0x338   : > { %1674 = vrsqrt.f32 %v742_v30  ;;  %vm771_vm10 = vmor %vm769_vm8, %vm770_vm7  ;;  %vm779_vm11 = vweird.f32 %v742_v30 }
 0x339   : > { %v765_v34 = vmul.f32 %v1673_v29, %v764_v32  ;;  %v762_v36 = vsel %vm761_vm6, %v1671_v10, %v758_v31  ;;  %v1006_v31 = vpop.permute.xlu2 %1005 }
 0x33a   : > { %v784_v57 = vmul.f32 %v762_v36, %v1881_v1 }
 0x33b   : > { %v766_v39 = vmul.f32 0.5, %v765_v34 }
 0x33c   : > { %v787_v40 = vpack.c.bf16 %v784_v57, %v783_v37 }
 0x33d   : > { %v767_v43 = vsub.f32 1.5, %v766_v39  ;;  %v958_v50 = vpop.f32.mrf.mxu0 }
 0x33e   : > { %v1675_v41 = vpop.eup %1674  ;;  %1523 = vmatmul.msk.bf16.vlgmr.msra.gmra.mxu2 %vm691_vm15, %v787_v40  ;;  %1525 = vmatmul.msk.bf16.vlgmr.msra.gmra.mxu3 %vm691_vm15, %v787_v40 }
 0x33f   : > { %v774_v38 = vmul.f32 %v1675_v41, %v742_v30  ;;  %1140 = vmatpush.bf16.msra.mxu2 %v1559_v2  ;;  %1212 = vmatpush.bf16.msra.mxu3 %v1907_v17  ;;  %v768_v44 = vmul.f32 %v1673_v29, %v767_v43  ;;  %vm780_vm9 = vweird.f32 %v1675_v41 }
 0x340   : > { %vm781_vm12 = vmor %vm779_vm11, %vm780_vm9 }
 0x341   : > { %v775_v42 = vmul.f32 %v1675_v41, %v774_v38  ;;  %v772_v46 = vsel %vm771_vm10, %v1673_v29, %v768_v44 }
 0x342   : > { %v785_v47 = vmul.f32 %v772_v46, %v1887_v6  ;;  %v797_v6 = vld [vmem:[%s2177_s7] sm:$0x3] }
 0x343   : > { %v776_v60 = vmul.f32 0.5, %v775_v42  ;;  %1141 = vmatpush.bf16.msra.mxu2 %v1551_v5  ;;  %1213 = vmatpush.bf16.msra.mxu3 %v1929_v26  ;;  %v2048_v2 = vperm.slane %v797_v6, 1 }
 0x345   : > { %v777_v1 = vsub.f32 1.5, %v776_v60  ;;  %v960_v51 = vpop.f32.mrf.mxu0 }
 0x347   : > { %v778_v45 = vmul.f32 %v1675_v41, %v777_v1  ;;  %1142 = vmatpush.bf16.msra.mxu2 %v1543_v18  ;;  %1214 = vmatpush.bf16.msra.mxu3 %v1951_v35  ;;  %v896_v35 = vld [vmem:[%s2179_s9] sm:$0x3] }
 0x348   : > { %v2057_v19 = vperm.slane %v896_v35, 1 }
 0x349   : > { %v782_v17 = vsel %vm781_vm12, %v1675_v41, %v778_v45 }
 0x34a   : > { %v786_v48 = vmul.f32 %v782_v17, %v1893_v11  ;;  %v2043_v11 = vperm.slane %v896_v35, 0 }
 0x34b   : > { %1143 = vmatpush.bf16.msra.mxu2 %v1535_v22  ;;  %1215 = vmatpush.bf16.msra.mxu3 %v1982_v49  ;;  %v799_v49 = vperm.slane %v797_v6, 0 }
 0x34c   : > { %v788_v26 = vpack.c.bf16 %v786_v48, %v785_v47  ;;  %v959_v52 = vadd.f32 %v958_v50, %v2043_v11 }
 0x34e   : > { %1524 = vmatmul.msk.bf16.gmra.mxu2 %vm691_vm15, %v788_v26  ;;  %1526 = vmatmul.msk.bf16.gmra.mxu3 %vm691_vm15, %v788_v26 }
 0x35e   : > { %1561 = vmatmul.msk.bf16.vlgmr.msrb.gmra.mxu2 %vm691_vm15, %v1985_v53 }
 0x3c1   : > { %v858_v54 = vpop.f32.mrf.mxu2  ;;  %v877_v55 = vpop.f32.mrf.mxu3 }
 0x3c2   : > { %v859_v56 = vadd.f32 %v858_v54, %v799_v49  ;;  %v878_v25 = vadd.f32 %v877_v55, %v2048_v2 }
 0x3c4   : > { %v975_v58 = vadd.f32 %v959_v52, %v859_v56 }
 0x3c6   : > { %v1562_v53 = vmul.f32 -1.442695, %v975_v58 }
 0x3c8   : > { %1676 = vpow2.f32 %v1562_v53 }
 0x3c9   : > { %v860_v59 = vpop.f32.mrf.mxu2  ;;  %v2046_v61 = vpop.f32.mrf.mxu3 }
 0x3ca   : > { %v861_v62 = vadd.f32 %v860_v59, %v799_v49  ;;  %v880_v55 = vadd.f32 %v2046_v61, %v2048_v2  ;;  %v898_v59 = vld [vmem:[#allocation3] sm:$0xff] }
 0x3ce   : > { %v1677_v63 = vpop.eup %1676 }
 0x3cf   : > { %v979_v0 = vadd.f32 1.0, %v1677_v63 }
 0x3d1   : > { %1678 = vrcp.f32 %v979_v0  ;;  %v863_v3 = vpop.f32.mrf.mxu2  ;;  %v882_v4 = vpop.f32.mrf.mxu3  ;;  %v991_v15 = vand.u32 2147483648, %v979_v0  ;;  %vm985_vm14 = vweird.f32 %v979_v0  ;;  %v989_v18 = vand.u32 2147483647, %v979_v0 }
 0x3d2   : > { %v2050_v5 = vadd.f32 %v863_v3, %v799_v49  ;;  %v2053_v7 = vadd.f32 %v882_v4, %v2048_v2 }
 0x3d3   : > { %v992_v21 = vor.u32 1.1754944e-38, %v991_v15  ;;  %vm990_vm1 = vcmp.eq.f32.partialorder %v989_v18, 8.507059e+37 }
 0x3d7   : > { %v1679_v8 = vpop.eup %1678 }
 0x3d8   : > { %v981_v9 = vmul.f32 %v1679_v8, %v979_v0  ;;  %vm986_vm13 = vweird.f32 %v1679_v8 }
 0x3d9   : > { %v865_v10 = vpop.f32.mrf.mxu2  ;;  %vm987_vm0 = vmor %vm985_vm14, %vm986_vm13  ;;  %v2069_v40 = vpop.f32.mrf.mxu3 }
 0x3da   : > { %v2055_v12 = vadd.f32 %v865_v10, %v799_v49  ;;  %v982_v13 = vsub.f32 1.0, %v981_v9  ;;  %v2085_v9 = vld [vmem:[%s2171_s1] sm:$0xff]  ;;  %v1010_v10 = vstv %s1807_s15 }
 0x3db   : > { %vm1011_vm6 = vcmp.eq.s32.totalorder %v2085_v9, %v1010_v10 }
 0x3dc   : > { %v983_v14 = vmul.f32 %v1679_v8, %v982_v13  ;;  %v1719_v13 = vmov 0.0  }
 0x3de   : > { %v984_v16 = vadd.f32 %v1679_v8, %v983_v14  ;;  %v1563_v14 = vsel %vm1011_vm6, 1.0, %v1719_v13 }
 0x3e0   : > { %v988_v20 = vsel %vm987_vm0, %v1679_v8, %v984_v16 }
 0x3e1   : > { %v971_v22 = vpop.f32.mrf.mxu2  ;;  %v993_v24 = vsel %vm990_vm1, %v992_v21, %v988_v20 }
 0x3e2   : > { %v972_v23 = vadd.f32 %v971_v22, %v2057_v19  ;;  %v998_v32 = vsub.f32 1.0, %v993_v24  ;;  %v1008_v34 = vmul.f32 %v1006_v31, %v993_v24 }
 0x3e4   : > { %v995_v27 = vmul.f32 %v993_v24, %v972_v23 }
 0x3e6   : > { %v996_v28 = vadd.f32 %v995_v27, %v878_v25 }
 0x3e8   : > { %1680 = vtanh.f32 %v996_v28 }
 0x3e9   : > { %v973_v29 = vpop.f32.mrf.mxu2 }
 0x3ee   : > { %v1681_v30 = vpop.eup %1680 }
 0x3ef   : > { %1000 = vrot.lane.b32.xlu1 %v1681_v30, %s1717_s26 }
 0x461   : > { %v1001_v33 = vpop.permute.xlu1 %1000 }
 0x462   : > { %v1003_v36 = vmul.f32 %v1001_v33, %v998_v32 }
 0x464   : > { %v2062_v37 = vadd.f32 %v1008_v34, %v1003_v36 }
 0x466   : > { %v1031_v57 = vpack.c.bf16 %v2062_v37, %v2062_v37 }
 0x468   : > { %1033 = vrot.lane.b32.xlu0 %v1031_v57, %s1717_s26 }
 0x4da   : > { %v1034_v39 = vpop.permute.xlu0 %1033 }
 0x4db   : > { %1564 = vmatmul.msk.bf16.vlgmr.msrb.gmra.mxu3 %vm691_vm15, %v1034_v39  ;;  %1565 = vmatmul.msk.bf16.vlgmr.msra.gmra.mxu0 %vm691_vm15, %v1034_v39 }
 0x558   : > { %v1060_v41 = vpop.f32.mrf.mxu0 }
 0x559   : > { %v1061_v49 = vadd.f32 %v1060_v41, %v2057_v19 }
 0x55e   : > { %v1047_v43 = vpop.f32.mrf.mxu3 }
 0x55f   : > { %v1048_v38 = vadd.f32 %v1047_v43, %v2043_v11 }
 0x560   : > { %v1062_v42 = vpop.f32.mrf.mxu0 }
 0x561   : > { %v1064_v44 = vadd.f32 %v1048_v38, %v861_v62  ;;  %v1718_v62 = vmov 0  }
 0x562   : > { %1651 = vset.pattern.permute.xlu1 %v1718_v62  ;;  %1652 = vset.pattern.permute.xlu0 %v1718_v62 }
 0x563   : > { %v1566_v60 = vmul.f32 -1.442695, %v1064_v44  ;;  %1653 = vset.pattern.permute.xlu2 %v1718_v62 }
 0x565   : > { %1682 = vpow2.f32 %v1566_v60 }
 0x566   : > { %v1049_v1 = vpop.f32.mrf.mxu3 }
 0x56b   : > { %v1683_v45 = vpop.eup %1682 }
 0x56c   : > { %v1068_v46 = vadd.f32 1.0, %v1683_v45 }
 0x56e   : > { %1684 = vrcp.f32 %v1068_v46  ;;  %v1080_v26 = vand.u32 2147483648, %v1068_v46  ;;  %v1078_v51 = vand.u32 2147483647, %v1068_v46  ;;  %vm1074_vm3 = vweird.f32 %v1068_v46 }
 0x570   : > { %v1081_v6 = vor.u32 1.1754944e-38, %v1080_v26  ;;  %vm1079_vm5 = vcmp.eq.f32.partialorder %v1078_v51, 8.507059e+37  ;;  %v1095_v51 = vstv %s1030_s24 }
 0x571   : > { %vm1096_vm11 = vcmp.eq.s32.totalorder %v2085_v9, %v1095_v51 }
 0x574   : > { %v1685_v17 = vpop.eup %1684 }
 0x575   : > { %v1070_v47 = vmul.f32 %v1685_v17, %v1068_v46  ;;  %vm1075_vm2 = vweird.f32 %v1685_v17 }
 0x576   : > { %vm1076_vm4 = vmor %vm1074_vm3, %vm1075_vm2 }
 0x577   : > { %v1071_v48 = vsub.f32 1.0, %v1070_v47 }
 0x579   : > { %v1072_v50 = vmul.f32 %v1685_v17, %v1071_v48 }
 0x57b   : > { %v1073_v35 = vadd.f32 %v1685_v17, %v1072_v50 }
 0x57d   : > { %v1077_v52 = vsel %vm1076_vm4, %v1685_v17, %v1073_v35 }
 0x57e   : > { %v1082_v54 = vsel %vm1079_vm5, %v1081_v6, %v1077_v52 }
 0x57f   : > { %v1084_v56 = vmul.f32 %v1082_v54, %v1061_v49  ;;  %v1087_v63 = vsub.f32 1.0, %v1082_v54  ;;  %v1093_v3 = vmul.f32 %v1082_v54, %v2062_v37 }
 0x581   : > { %v1085_v58 = vadd.f32 %v1084_v56, %v880_v55  ;;  %v1180_v55 = vstv %s1115_s25 }
 0x582   : > { %vm1181_vm12 = vcmp.eq.s32.totalorder %v2085_v9, %v1180_v55 }
 0x583   : > { %1686 = vtanh.f32 %v1085_v58  ;;  %v1571_v56 = vsel %vm1181_vm12, 1.0, %v1719_v13 }
 0x589   : > { %v1687_v53 = vpop.eup %1686 }
 0x58a   : > { %1089 = vrot.lane.b32.xlu2 %v1687_v53, %s1717_s26 }
 0x592   : > { %1015 = vrot.lane.b32.xlu2 %v898_v59, %s1717_s26 }
 0x5e4   : > { %v1090_v0 = vpop.permute.xlu2 %1089 }
 0x5e5   : > { %v1092_v4 = vmul.f32 %v1090_v0, %v1087_v63 }
 0x5e7   : > { %v2078_v61 = vadd.f32 %v1093_v3, %v1092_v4 }
 0x5e9   : > { %v1116_v8 = vpack.c.bf16 %v2078_v61, %v2078_v61 }
 0x5eb   : > { %1118 = vrot.lane.b32.xlu1 %v1116_v8, %s1717_s26 }
 0x5ec   : > { %v1016_v16 = vpop.permute.xlu2 %1015 }
 0x5ed   : > { %v1018_v18 = vsub.f32 %v2062_v37, %v1016_v16 }
 0x5f3   : > { %1021 = vperm.xlu1 %1651, %v1563_v14  }
 0x65d   : > { %v1119_v15 = vpop.permute.xlu1 %1118 }
 0x65e   : > { %1568 = vmatmul.msk.bf16.vlgmr.msrb.gmra.mxu1 %vm691_vm15, %v1119_v15  ;;  %1569 = vmatmul.msk.bf16.vlgmr.msra.gmra.mxu2 %vm691_vm15, %v1119_v15 }
 0x665   : > { %v1022_v20 = vpop.permute.xlu1 %1021 }
 0x666   : > { %v1024_v21 = vmul.f32 %v1022_v20, %v1018_v18 }
 0x668   : > { %1026 = vrot.lane.b32.xlu2 %v1024_v21, %s1717_s26 }
 0x6c2   : > { %v1027_v22 = vpop.permute.xlu2 %1026 }
 0x6c3   : > { %v1029_v23 = vadd.f32 %v1027_v22, %v898_v59 }
 0x6c5   : > { %1100 = vrot.lane.b32.xlu1 %v1029_v23, %s1717_s26 }
 0x6db   : > { %v1132_v24 = vpop.f32.mrf.mxu1 }
 0x6dc   : > { %v1133_v25 = vadd.f32 %v1132_v24, %v2043_v11 }
 0x6de   : > { %v1149_v27 = vadd.f32 %v1133_v25, %v2050_v5  ;;  %v885_v25 = vadd.f32 %v2069_v40, %v2048_v2 }
 0x6e0   : > { %v1570_v28 = vmul.f32 -1.442695, %v1149_v27 }
 0x6e1   : > { %v1145_v29 = vpop.f32.mrf.mxu2 }
 0x6e2   : > { %1688 = vpow2.f32 %v1570_v28  ;;  %v1146_v38 = vadd.f32 %v1145_v29, %v2057_v19 }
 0x6e3   : > { %v1134_v30 = vpop.f32.mrf.mxu1 }
 0x6e8   : > { %v1689_v31 = vpop.eup %1688 }
 0x6e9   : > { %v1153_v32 = vadd.f32 1.0, %v1689_v31  ;;  %v1147_v33 = vpop.f32.mrf.mxu2 }
 0x6eb   : > { %1690 = vrcp.f32 %v1153_v32  ;;  %v1165_v57 = vand.u32 2147483648, %v1153_v32  ;;  %v1163_v41 = vand.u32 2147483647, %v1153_v32  ;;  %vm1159_vm8 = vweird.f32 %v1153_v32 }
 0x6ed   : > { %v1166_v5 = vor.u32 1.1754944e-38, %v1165_v57  ;;  %vm1164_vm10 = vcmp.eq.f32.partialorder %v1163_v41, 8.507059e+37 }
 0x6f1   : > { %v1691_v34 = vpop.eup %1690 }
 0x6f2   : > { %v1155_v36 = vmul.f32 %v1691_v34, %v1153_v32  ;;  %vm1160_vm7 = vweird.f32 %v1691_v34 }
 0x6f3   : > { %vm1161_vm9 = vmor %vm1159_vm8, %vm1160_vm7 }
 0x6f4   : > { %v1156_v37 = vsub.f32 1.0, %v1155_v36 }
 0x6f6   : > { %v1157_v39 = vmul.f32 %v1691_v34, %v1156_v37 }
 0x6f8   : > { %v1158_v43 = vadd.f32 %v1691_v34, %v1157_v39 }
 0x6fa   : > { %v1162_v42 = vsel %vm1161_vm9, %v1691_v34, %v1158_v43  ;;  %v1265_v34 = vstv %s1200_s27 }
 0x6fb   : > { %v1167_v44 = vsel %vm1164_vm10, %v1166_v5, %v1162_v42  ;;  %vm1266_vm2 = vcmp.eq.s32.totalorder %v2085_v9, %v1265_v34 }
 0x6fc   : > { %v1169_v60 = vmul.f32 %v1167_v44, %v1146_v38  ;;  %v1172_v46 = vsub.f32 1.0, %v1167_v44  ;;  %v1178_v47 = vmul.f32 %v1167_v44, %v2078_v61 }
 0x6fe   : > { %v1170_v1 = vadd.f32 %v1169_v60, %v2053_v7  ;;  %v1567_v7 = vsel %vm1096_vm11, 1.0, %v1719_v13 }
 0x700   : > { %1692 = vtanh.f32 %v1170_v1 }
 0x706   : > { %v1693_v45 = vpop.eup %1692 }
 0x707   : > { %1174 = vrot.lane.b32.xlu0 %v1693_v45, %s1717_s26 }
 0x737   : > { %v1101_v6 = vpop.permute.xlu1 %1100 }
 0x738   : > { %v1103_v49 = vsub.f32 %v2078_v61, %v1101_v6 }
 0x779   : > { %v1175_v17 = vpop.permute.xlu0 %1174 }
 0x77a   : > { %v1177_v48 = vmul.f32 %v1175_v17, %v1172_v46 }
 0x77c   : > { %v2102_v26 = vadd.f32 %v1178_v47, %v1177_v48 }
 0x77e   : > { %v1201_v50 = vpack.c.bf16 %v2102_v26, %v2102_v26 }
 0x780   : > { %1203 = vrot.lane.b32.xlu0 %v1201_v50, %s1717_s26 }
 0x788   : > { %1106 = vperm.xlu0 %1652, %v1567_v7  }
 0x7f2   : > { %v1204_v35 = vpop.permute.xlu0 %1203 }
 0x7f3   : > { %1572 = vmatmul.msk.bf16.vlgmr.msra.gmra.mxu3 %vm691_vm15, %v1204_v35  ;;  %1573 = vmatmul.msk.bf16.vlgmr.msrb.gmra.mxu0 %vm691_vm15, %v1204_v35 }
 0x7fa   : > { %v1107_v52 = vpop.permute.xlu0 %1106 }
 0x7fb   : > { %v1109_v54 = vmul.f32 %v1107_v52, %v1103_v49 }
 0x7fd   : > { %1111 = vrot.lane.b32.xlu2 %v1109_v54, %s1717_s26 }
 0x805   : > { %1191 = vperm.xlu2 %1653, %v1571_v56  }
 0x857   : > { %v1112_v58 = vpop.permute.xlu2 %1111 }
 0x858   : > { %v1114_v53 = vadd.f32 %v1112_v58, %v1029_v23 }
 0x85a   : > { %1185 = vrot.lane.b32.xlu1 %v1114_v53, %s1717_s26 }
 0x85f   : > { %v1192_v31 = vpop.permute.xlu2 %1191 }
 0x870   : > { %v1230_v59 = vpop.f32.mrf.mxu0 }
 0x876   : > { %v1217_v62 = vpop.f32.mrf.mxu3 }
 0x877   : > { %v1218_v63 = vadd.f32 %v1217_v62, %v2043_v11 }
 0x878   : > { %v1232_v0 = vpop.f32.mrf.mxu0 }
 0x879   : > { %v1234_v3 = vadd.f32 %v1218_v63, %v2055_v12  ;;  %v1231_v12 = vadd.f32 %v1230_v59, %v2057_v19  ;;  %v1575_v19 = vsel %vm1266_vm2, 1.0, %v1719_v13 }
 0x87b   : > { %v1574_v4 = vmul.f32 -1.442695, %v1234_v3 }
 0x87d   : > { %1694 = vpow2.f32 %v1574_v4 }
 0x87e   : > { %v1219_v61 = vpop.f32.mrf.mxu3 }
 0x883   : > { %v1695_v8 = vpop.eup %1694 }
 0x884   : > { %v1238_v10 = vadd.f32 1.0, %v1695_v8 }
 0x886   : > { %1696 = vrcp.f32 %v1238_v10  ;;  %v1250_v18 = vand.u32 2147483648, %v1238_v10  ;;  %v1248_v21 = vand.u32 2147483647, %v1238_v10  ;;  %vm1244_vm14 = vweird.f32 %v1238_v10 }
 0x888   : > { %v1251_v11 = vor.u32 1.1754944e-38, %v1250_v18  ;;  %vm1249_vm1 = vcmp.eq.f32.partialorder %v1248_v21, 8.507059e+37 }
 0x88c   : > { %v1697_v14 = vpop.eup %1696 }
 0x88d   : > { %v1240_v15 = vmul.f32 %v1697_v14, %v1238_v10  ;;  %vm1245_vm13 = vweird.f32 %v1697_v14 }
 0x88e   : > { %vm1246_vm0 = vmor %vm1244_vm14, %vm1245_vm13 }
 0x88f   : > { %v1241_v16 = vsub.f32 1.0, %v1240_v15 }
 0x891   : > { %v1242_v20 = vmul.f32 %v1697_v14, %v1241_v16 }
 0x893   : > { %v1243_v22 = vadd.f32 %v1697_v14, %v1242_v20 }
 0x895   : > { %v1247_v23 = vsel %vm1246_vm0, %v1697_v14, %v1243_v22 }
 0x896   : > { %v1252_v24 = vsel %vm1249_vm1, %v1251_v11, %v1247_v23 }
 0x897   : > { %v1254_v27 = vmul.f32 %v1252_v24, %v1231_v12  ;;  %v1257_v37 = vsub.f32 1.0, %v1252_v24  ;;  %v1263_v39 = vmul.f32 %v1252_v24, %v2102_v26 }
 0x899   : > { %v1255_v28 = vadd.f32 %v1254_v27, %v885_v25 }
 0x89b   : > { %1698 = vtanh.f32 %v1255_v28 }
 0x8a1   : > { %v1699_v29 = vpop.eup %1698 }
 0x8a2   : > { %1259 = vrot.lane.b32.xlu0 %v1699_v29, %s1717_s26 }
 0x8cc   : > { %v1186_v30 = vpop.permute.xlu1 %1185 }
 0x8cd   : > { %v1188_v32 = vsub.f32 %v2102_v26, %v1186_v30 }
 0x8cf   : > { %v1194_v33 = vmul.f32 %v1192_v31, %v1188_v32 }
 0x8d1   : > { %1196 = vrot.lane.b32.xlu1 %v1194_v33, %s1717_s26 }
 0x8d9   : > { %1276 = vperm.xlu1 %1651, %v1575_v19  }
 0x914   : > { %v1260_v36 = vpop.permute.xlu0 %1259 }
 0x915   : > { %v1262_v57 = vmul.f32 %v1260_v36, %v1257_v37 }
 0x917   : > { %v1264_v41 = vadd.f32 %v1263_v39, %v1262_v57 }
 0x943   : > { %v1197_v2 = vpop.permute.xlu1 %1196 }
 0x944   : > { %v1199_v40 = vadd.f32 %v1197_v2, %v1114_v53 }
 0x946   : > { %1270 = vrot.lane.b32.xlu2 %v1199_v40, %s1717_s26 }
 0x94b   : > { %v1277_v38 = vpop.permute.xlu1 %1276 }
 0x94e   : > { %1286 = vrot.lane.b32.xlu2 %v1264_v41, %s1717_s26 }
 0x9a0   : > { %v1271_v43 = vpop.permute.xlu2 %1270 }
 0x9a1   : > { %v1273_v5 = vsub.f32 %v1264_v41, %v1271_v43 }
 0x9a3   : > { %v1279_v42 = vmul.f32 %v1277_v38, %v1273_v5 }
 0x9a5   : > { %1281 = vrot.lane.b32.xlu0 %v1279_v42, %s1717_s26 }
 0x9a8   : > { %v1287_v9 = vpop.permute.xlu2 %1286 }
 0x9a9   : > { %1289 = vst.msk [vmem:[#allocation2] sm:$0xff] %vm691_vm15, %v1287_v9 }
 0xa16   : > { %1294 = sbr.rel (%p1576_p5) target bundleno = 3133 (0xc3d), region = 84 }
 0xa17   : > { %v1282_v13 = vpop.permute.xlu0 %1281 }
 0xa18   : > { %v1284_v44 = vadd.f32 %v1282_v13, %v1199_v40 }
 0xa1a   : > { %1290 = vst.msk [vmem:[#allocation3] sm:$0xff] %vm691_vm15, %v1284_v44 }
 0xa1b   : > { %v1633_v60 = vld [vmem:[%s2180_s10 + $0x18] sm:$0xff]  ;;  %v1632_v1 = vld [vmem:[%s2180_s10 + $0x10] sm:$0xff]  ;;  %v1631_v45 = vld [vmem:[%s2180_s10 + $0x8] sm:$0xff]  ;;  %v1295_v17 = vpack.c.bf16 %v1284_v44, %v1284_v44  ;;  %vm1349_vm3 = vcmask 261120   ;;  %v1720_v35 = vmov 32.0   ;;  %vm1416_vm7 = vcmask 39936  }
 0xa1c   : > { %1339 = vmatpush.bf16.msra.mxu0 %v1633_v60  ;;  %v1630_v46 = vld [vmem:[%s2180_s10] sm:$0xff]  ;;  %1702 = vrcp.f32 %v1720_v35  ;;  %v1635_v0 = vld [vmem:[%s2182_s12 + $0x8] sm:$0xff] }
 0xa1d   : > { %v1700_v47 = vld [vmem:[%s2181_s11] ss:$0 sm:$0xff]  ;;  %1409 = vmatpush.bf16.msra.mxu1 %v1635_v0 }
 0xa1e   : > { %v1634_v3 = vld [vmem:[%s2182_s12] sm:$0xff] }
 0xa1f   : > { %v1701_v12 = vld [vmem:[%s2183_s13] ss:$0 sm:$0xff] }
 0xa20   : > { %1340 = vmatpush.bf16.msra.mxu0 %v1632_v1 }
 0xa21   : > { %1410 = vmatpush.bf16.msra.mxu1 %v1634_v3 }
 0xa22   : > { %v1703_v6 = vpop.eup %1702 }
 0xa23   : > { %v1354_v49 = vmul.f32 32.0, %v1703_v6 }
 0xa24   : > { %1341 = vmatpush.bf16.msra.mxu0 %v1631_v45 }
 0xa25   : > { %v1355_v52 = vsub.f32 1.0, %v1354_v49 }
 0xa27   : > { %v1356_v54 = vmul.f32 %v1703_v6, %v1355_v52 }
 0xa28   : > { %1342 = vmatpush.bf16.msra.mxu0 %v1630_v46 }
 0xa29   : > { %v1357_v55 = vadd.f32 %v1703_v6, %v1356_v54 }
 0xa2b   : > { %1593 = vmatmul.msk.bf16.vlgmr.msra.gmra.mxu0 %vm691_vm15, %v1295_v17  ;;  %vm1358_vm15 = vweird.f32 %v1703_v6 }
 0xa2c   : > { %v1359_v56 = vsel %vm1358_vm15, %v1703_v6, %v1357_v55 }
 0xaa8   : > { %v1344_v48 = vpop.f32.mrf.mxu0 }
 0xaa9   : > { %v1345_v26 = vadd.f32 %v1700_v47, %v1344_v48 }
 0xaab   : > { %v1348_v50 = vmax.f32 %v1345_v26, 0.0 }
 0xaad   : > { %v1350_v51 = vsel %vm1349_vm3, %v1348_v50, 0.0 }
 0xaae   : > { %1351 = vadd.xlane.f32.xlu0 %v1350_v51 }
 0xab0   : > { %v1346_v7 = vpop.f32.mrf.mxu0 }
 0xb21   : > { %v1352_v58 = vpop.xlane.xlu0 %1351 }
 0xb22   : > { %v1360_v53 = vmul.f32 %v1359_v56, %v1352_v58 }
 0xb24   : > { %v1361_v59 = vsub.f32 %v1348_v50, %v1360_v53 }
 0xb26   : > { %v1362_v62 = vmul.f32 %v1361_v59, %v1361_v59 }
 0xb28   : > { %v1363_v63 = vsel %vm1349_vm3, %v1362_v62, 0.0 }
 0xb29   : > { %1364 = vadd.xlane.f32.xlu0 %v1363_v63 }
 0xb9c   : > { %v1365_v4 = vpop.xlane.xlu0 %1364 }
 0xb9d   : > { %v1366_v61 = vmul.f32 %v1365_v4, %v1359_v56 }
 0xb9f   : > { %v1367_v8 = vadd.f32 1e-05, %v1366_v61 }
 0xba1   : > { %1704 = vrsqrt.f32 %v1367_v8  ;;  %vm1374_vm5 = vweird.f32 %v1367_v8 }
 0xba7   : > { %v1705_v10 = vpop.eup %1704 }
 0xba8   : > { %v1369_v14 = vmul.f32 %v1705_v10, %v1367_v8  ;;  %vm1375_vm4 = vweird.f32 %v1705_v10 }
 0xba9   : > { %vm1376_vm6 = vmor %vm1374_vm5, %vm1375_vm4 }
 0xbaa   : > { %v1370_v15 = vmul.f32 %v1705_v10, %v1369_v14 }
 0xbac   : > { %v1371_v16 = vmul.f32 0.5, %v1370_v15 }
 0xbae   : > { %v1372_v18 = vsub.f32 1.5, %v1371_v16 }
 0xbb0   : > { %v1373_v20 = vmul.f32 %v1705_v10, %v1372_v18 }
 0xbb2   : > { %v1377_v21 = vsel %vm1376_vm6, %v1705_v10, %v1373_v20 }
 0xbb3   : > { %v1378_v22 = vmul.f32 %v1377_v21, %v1361_v59 }
 0xbb5   : > { %v1379_v11 = vpack.c.bf16 %v1378_v22, %v1378_v22 }
 0xbb7   : > { %1602 = vmatmul.msk.bf16.vlgmr.msra.gmra.mxu1 %vm1349_vm3, %v1379_v11 }
 0xc34   : > { %v1412_v23 = vpop.f32.mrf.mxu1 }
 0xc35   : > { %v1413_v24 = vadd.f32 %v1701_v12, %v1412_v23 }
 0xc37   : > { %1417 = vst.msk [vmem:[%s2184_s14] sm:$0xff] %vm1416_vm7, %v1413_v24 }
 0xc3c   : > { %v1414_v25 = vpop.f32.mrf.mxu1 }
 0xc3d PF: > { %s24_s29 = sadd.s32 1, %s1712_s29  }
 0xc3e   : > { %p21_p6 = scmp.ge.s32.totalorder %s24_s29, 4  }
 0xc40   :  { %23 = sbr.rel (!%p21_p6) target bundleno = 1 (0x1), region = 110 }

</bundles_post_ra>
